<compile_context>
chip_gen: v7x
topology: tpu7x:2x2x1
jax: 0.10.0
libtpu: 0.0.40
codegen_flags: <defaults>
</compile_context>

<pallas_src>
import jax
import jax.numpy as jnp
from jax.experimental import pallas as pl
from jax.experimental.pallas import tpu as pltpu


def _leaky_relu(v, slope=0.2):
    return jnp.where(v > 0, v, slope * v)


def _round_up(n, m):
    return ((n + m - 1) // m) * m


def disc_mlp_kernel(x_ref,
                    w1_ref, b1_ref,
                    w2_ref, b2_ref,
                    w3_ref, b3_ref,
                    w4_ref, b4_ref,
                    o_ref):
    """One batch tile: 3 MXU matmuls + fused LeakyReLU + VPU final reduction."""
    x = x_ref[...]  # (TILE_B, dim_img) bf16

    h = jnp.dot(x, w1_ref[...], preferred_element_type=jnp.float32) + b1_ref[...]
    h = _leaky_relu(h).astype(jnp.bfloat16)
    # Dropout(0.3) -> identity at inference time.

    h = jnp.dot(h, w2_ref[...], preferred_element_type=jnp.float32) + b2_ref[...]
    h = _leaky_relu(h).astype(jnp.bfloat16)

    h = jnp.dot(h, w3_ref[...], preferred_element_type=jnp.float32) + b3_ref[...]
    h = _leaky_relu(h)  # keep f32 for the VPU/XLU final layer

    # Final Linear(h, 1): elementwise multiply with the (1, h) weight row and
    # a lane reduction — avoids an N=1 MXU matmul.
    y = jnp.sum(h * w4_ref[...].astype(jnp.float32), axis=-1, keepdims=True)
    y = y + b4_ref[...]
    o_ref[...] = y.astype(o_ref.dtype)


def discriminador_forward(x, params, *, tile_b=128):
    """x: (B, dim_img) float32; params: list of (W, b) with W as (in, out)."""
    (w1, b1), (w2, b2), (w3, b3), (w4, b4) = params
    B, dim_img = x.shape
    h4, h2, h1 = w1.shape[1], w2.shape[1], w3.shape[1]

    # bf16 on the streamed / MXU side; biases stay f32.
    x_bf = x.astype(jnp.bfloat16)
    w1b = w1.astype(jnp.bfloat16)
    w2b = w2.astype(jnp.bfloat16)
    w3b = w3.astype(jnp.bfloat16)
    w4_row = w4.reshape(1, h1).astype(jnp.bfloat16)   # (1, dim_oculta)
    b4r = b4.reshape(1, 1)

    # Choose a batch tile: multiple of 8 sublanes, no larger than (padded) B.
    tile_b = min(tile_b, _round_up(B, 8))
    tile_b = _round_up(tile_b, 8)
    b_pad = _round_up(B, tile_b)
    if b_pad != B:
        x_bf = jnp.pad(x_bf, ((0, b_pad - B), (0, 0)))
    grid = (b_pad // tile_b,)

    # x tile streams with the grid; weights/biases are VMEM-resident (constant block).
    x_spec = pl.BlockSpec((tile_b, dim_img), lambda i: (i, 0))

    def const_spec(arr):
        return pl.BlockSpec(arr.shape, lambda i: (0, 0))

    in_specs = [
        x_spec,
        const_spec(w1b), const_spec(b1),
        const_spec(w2b), const_spec(b2),
        const_spec(w3b), const_spec(b3),
        const_spec(w4_row), const_spec(b4r),
    ]
    out_specs = pl.BlockSpec((tile_b, 1), lambda i: (i, 0))

    flops = 2 * b_pad * (dim_img * h4 + h4 * h2 + h2 * h1 + h1)
    bytes_accessed = (
        b_pad * dim_img * 2                       # x (bf16)
        + (dim_img * h4 + h4 * h2 + h2 * h1 + h1) * 2   # weights (bf16)
        + (h4 + h2 + h1 + 1) * 4                  # biases (f32)
        + b_pad * 1 * 4                           # output (f32)
    )

    out = pl.pallas_call(
        disc_mlp_kernel,
        out_shape=jax.ShapeDtypeStruct((b_pad, 1), jnp.float32),
        grid=grid,
        in_specs=in_specs,
        out_specs=out_specs,
        compiler_params=pltpu.CompilerParams(
            dimension_semantics=("parallel",)),
        cost_estimate=pl.CostEstimate(
            flops=flops, transcendentals=0, bytes_accessed=bytes_accessed),
    )(x_bf, w1b, b1, w2b, b2, w3b, b3, w4_row, b4r)

    return out[:B]


def init_params(key, dim_img, dim_oculta):
    """Deterministic init mimicking nn.Linear's U(-1/sqrt(fan_in), 1/sqrt(fan_in)).

    Weights are stored as (in_features, out_features); biases as (1, out_features).
    """
    dims = [dim_img, dim_oculta * 4, dim_oculta * 2, dim_oculta, 1]
    params = []
    for i in range(4):
        fan_in, fan_out = dims[i], dims[i + 1]
        key, kw, kb = jax.random.split(key, 3)
        bound = 1.0 / (fan_in ** 0.5)
        w = jax.random.uniform(kw, (fan_in, fan_out), jnp.float32, -bound, bound)
        b = jax.random.uniform(kb, (1, fan_out), jnp.float32, -bound, bound)
        params.append((w, b))
    return params


def reference_forward(x, params):
    """Pure-JAX reference using the same bf16 quantization of x / weights."""
    h = x.astype(jnp.bfloat16).astype(jnp.float32)
    for i, (w, b) in enumerate(params):
        w_q = w.astype(jnp.bfloat16).astype(jnp.float32)
        h = h @ w_q + b
        if i < 3:
            h = jnp.where(h > 0, h, 0.2 * h)
    return h


if __name__ == "__main__":
    # Module defaults: dim_img=784, dim_oculta=128; modest batch to exercise the grid.
    batch = 256
    dim_img = 784
    dim_oculta = 128

    key = jax.random.PRNGKey(0)
    key, kx = jax.random.split(key)
    x = jax.random.normal(kx, (batch, dim_img), jnp.float32)

    params = init_params(key, dim_img, dim_oculta)

    out = discriminador_forward(x, params)
    out = jax.block_until_ready(out)

    ref = reference_forward(x, params)
    assert out.shape == (batch, 1)
    assert jnp.allclose(out, ref, atol=2e-2, rtol=2e-2), "mismatch vs JAX reference"

    print("KERNEL_OK")
</pallas_src>

<mosaic_0001>
module attributes {stable_mosaic.version = 11 : i64} {
  func.func @disc_mlp_kernel(%arg0: i32, %arg1: memref<128x784xbf16, #tpu.memory_space<vmem>>, %arg2: memref<784x512xbf16, #tpu.memory_space<vmem>>, %arg3: memref<1x512xf32, #tpu.memory_space<vmem>>, %arg4: memref<512x256xbf16, #tpu.memory_space<vmem>>, %arg5: memref<1x256xf32, #tpu.memory_space<vmem>>, %arg6: memref<256x128xbf16, #tpu.memory_space<vmem>>, %arg7: memref<1x128xf32, #tpu.memory_space<vmem>>, %arg8: memref<1x128xbf16, #tpu.memory_space<vmem>>, %arg9: memref<1x1xf32, #tpu.memory_space<vmem>>, %arg10: memref<128x1xf32, #tpu.memory_space<vmem>>) attributes {dimension_semantics = [#tpu.dimension_semantics<parallel>], iteration_bounds = array<i64: 2>, scalar_prefetch = 0 : i64, scratch_operands = 0 : i64, tpu.core_type = #tpu.core_type<tc>, window_params = [{transform_indices = @transform_0, window_bounds = array<i64: 128, 784>}, {pipeline_mode = #tpu.pipeline_mode<synchronous>, transform_indices = @transform_1, window_bounds = array<i64: 784, 512>}, {pipeline_mode = #tpu.pipeline_mode<synchronous>, transform_indices = @transform_2, window_bounds = array<i64: 1, 512>}, {pipeline_mode = #tpu.pipeline_mode<synchronous>, transform_indices = @transform_3, window_bounds = array<i64: 512, 256>}, {pipeline_mode = #tpu.pipeline_mode<synchronous>, transform_indices = @transform_4, window_bounds = array<i64: 1, 256>}, {pipeline_mode = #tpu.pipeline_mode<synchronous>, transform_indices = @transform_5, window_bounds = array<i64: 256, 128>}, {pipeline_mode = #tpu.pipeline_mode<synchronous>, transform_indices = @transform_6, window_bounds = array<i64: 1, 128>}, {pipeline_mode = #tpu.pipeline_mode<synchronous>, transform_indices = @transform_7, window_bounds = array<i64: 1, 128>}, {pipeline_mode = #tpu.pipeline_mode<synchronous>, transform_indices = @transform_8, window_bounds = array<i64: 1, 1>}, {transform_indices = @transform_9, window_bounds = array<i64: 128, 1>}]} {
    %c0 = arith.constant 0 : index
    %c0_0 = arith.constant 0 : index
    %0 = vector.load %arg1[%c0, %c0_0] : memref<128x784xbf16, #tpu.memory_space<vmem>>, vector<128x784xbf16>
    %c0_1 = arith.constant 0 : index
    %c0_2 = arith.constant 0 : index
    %1 = vector.load %arg2[%c0_1, %c0_2] : memref<784x512xbf16, #tpu.memory_space<vmem>>, vector<784x512xbf16>
    %cst = arith.constant dense<0.000000e+00> : vector<128x512xf32>
    %2 = tpu.matmul %0, %1, %cst {dimension_numbers = #tpu.dot_dimension_numbers<[1], [0], [0], [1], [0, 0, 1, 1], [], []>} : vector<128x784xbf16>, vector<784x512xbf16>, vector<128x512xf32> -> vector<128x512xf32>
    %c0_3 = arith.constant 0 : index
    %c0_4 = arith.constant 0 : index
    %3 = vector.load %arg3[%c0_3, %c0_4] : memref<1x512xf32, #tpu.memory_space<vmem>>, vector<1x512xf32>
    %4 = vector.broadcast %3 : vector<1x512xf32> to vector<128x512xf32>
    %5 = arith.addf %2, %4 : vector<128x512xf32>
    %cst_5 = arith.constant 0.000000e+00 : f32
    %6 = vector.broadcast %cst_5 : f32 to vector<128x512xf32>
    %7 = arith.cmpf ogt, %5, %6 : vector<128x512xf32>
    %cst_6 = arith.constant 2.000000e-01 : f32
    %8 = vector.broadcast %cst_6 : f32 to vector<128x512xf32>
    %9 = arith.mulf %8, %5 : vector<128x512xf32>
    %10 = arith.select %7, %5, %9 : vector<128x512xi1>, vector<128x512xf32>
    %11 = arith.truncf %10 : vector<128x512xf32> to vector<128x512xbf16>
    %c0_7 = arith.constant 0 : index
    %c0_8 = arith.constant 0 : index
    %12 = vector.load %arg4[%c0_7, %c0_8] : memref<512x256xbf16, #tpu.memory_space<vmem>>, vector<512x256xbf16>
    %cst_9 = arith.constant dense<0.000000e+00> : vector<128x256xf32>
    %13 = tpu.matmul %11, %12, %cst_9 {dimension_numbers = #tpu.dot_dimension_numbers<[1], [0], [0], [1], [0, 0, 1, 1], [], []>} : vector<128x512xbf16>, vector<512x256xbf16>, vector<128x256xf32> -> vector<128x256xf32>
    %c0_10 = arith.constant 0 : index
    %c0_11 = arith.constant 0 : index
    %14 = vector.load %arg5[%c0_10, %c0_11] : memref<1x256xf32, #tpu.memory_space<vmem>>, vector<1x256xf32>
    %15 = vector.broadcast %14 : vector<1x256xf32> to vector<128x256xf32>
    %16 = arith.addf %13, %15 : vector<128x256xf32>
    %cst_12 = arith.constant 0.000000e+00 : f32
    %17 = vector.broadcast %cst_12 : f32 to vector<128x256xf32>
    %18 = arith.cmpf ogt, %16, %17 : vector<128x256xf32>
    %cst_13 = arith.constant 2.000000e-01 : f32
    %19 = vector.broadcast %cst_13 : f32 to vector<128x256xf32>
    %20 = arith.mulf %19, %16 : vector<128x256xf32>
    %21 = arith.select %18, %16, %20 : vector<128x256xi1>, vector<128x256xf32>
    %22 = arith.truncf %21 : vector<128x256xf32> to vector<128x256xbf16>
    %c0_14 = arith.constant 0 : index
    %c0_15 = arith.constant 0 : index
    %23 = vector.load %arg6[%c0_14, %c0_15] : memref<256x128xbf16, #tpu.memory_space<vmem>>, vector<256x128xbf16>
    %cst_16 = arith.constant dense<0.000000e+00> : vector<128x128xf32>
    %24 = tpu.matmul %22, %23, %cst_16 {dimension_numbers = #tpu.dot_dimension_numbers<[1], [0], [0], [1], [0, 0, 1, 1], [], []>} : vector<128x256xbf16>, vector<256x128xbf16>, vector<128x128xf32> -> vector<128x128xf32>
    %c0_17 = arith.constant 0 : index
    %c0_18 = arith.constant 0 : index
    %25 = vector.load %arg7[%c0_17, %c0_18] : memref<1x128xf32, #tpu.memory_space<vmem>>, vector<1x128xf32>
    %26 = vector.broadcast %25 : vector<1x128xf32> to vector<128x128xf32>
    %27 = arith.addf %24, %26 : vector<128x128xf32>
    %cst_19 = arith.constant 0.000000e+00 : f32
    %28 = vector.broadcast %cst_19 : f32 to vector<128x128xf32>
    %29 = arith.cmpf ogt, %27, %28 : vector<128x128xf32>
    %cst_20 = arith.constant 2.000000e-01 : f32
    %30 = vector.broadcast %cst_20 : f32 to vector<128x128xf32>
    %31 = arith.mulf %30, %27 : vector<128x128xf32>
    %32 = arith.select %29, %27, %31 : vector<128x128xi1>, vector<128x128xf32>
    %c0_21 = arith.constant 0 : index
    %c0_22 = arith.constant 0 : index
    %33 = vector.load %arg8[%c0_21, %c0_22] : memref<1x128xbf16, #tpu.memory_space<vmem>>, vector<1x128xbf16>
    %34 = arith.extf %33 : vector<1x128xbf16> to vector<1x128xf32>
    %35 = vector.broadcast %34 : vector<1x128xf32> to vector<128x128xf32>
    %36 = arith.mulf %32, %35 : vector<128x128xf32>
    %cst_23 = arith.constant dense<0.000000e+00> : vector<128xf32>
    %37 = vector.multi_reduction <add>, %36, %cst_23 [1] : vector<128x128xf32> to vector<128xf32>
    %38 = vector.shape_cast %37 : vector<128xf32> to vector<128x1xf32>
    %c0_24 = arith.constant 0 : index
    %c0_25 = arith.constant 0 : index
    %39 = vector.load %arg9[%c0_24, %c0_25] : memref<1x1xf32, #tpu.memory_space<vmem>>, vector<1x1xf32>
    %40 = vector.broadcast %39 : vector<1x1xf32> to vector<128x1xf32>
    %41 = arith.addf %38, %40 : vector<128x1xf32>
    %c0_26 = arith.constant 0 : index
    %c0_27 = arith.constant 0 : index
    %42 = vector.load %arg10[%c0_26, %c0_27] : memref<128x1xf32, #tpu.memory_space<vmem>>, vector<128x1xf32>
    tpu.vector_store %arg10[%c0_26, %c0_27], %41 {strides = array<i32>} : memref<128x1xf32, #tpu.memory_space<vmem>>, vector<128x1xf32>,
    return
  }
  func.func @transform_0(%arg0: i32) -> (i32, i32) {
    %c0_i32 = arith.constant 0 : i32
    %c0_i32_0 = arith.constant 0 : i32
    return %arg0, %c0_i32 : i32, i32
  }
  func.func @transform_1(%arg0: i32) -> (i32, i32) {
    %c0_i32 = arith.constant 0 : i32
    %c0_i32_0 = arith.constant 0 : i32
    %c0_i32_1 = arith.constant 0 : i32
    return %c0_i32, %c0_i32_0 : i32, i32
  }
  func.func @transform_2(%arg0: i32) -> (i32, i32) {
    %c0_i32 = arith.constant 0 : i32
    %c0_i32_0 = arith.constant 0 : i32
    %c0_i32_1 = arith.constant 0 : i32
    return %c0_i32, %c0_i32_0 : i32, i32
  }
  func.func @transform_3(%arg0: i32) -> (i32, i32) {
    %c0_i32 = arith.constant 0 : i32
    %c0_i32_0 = arith.constant 0 : i32
    %c0_i32_1 = arith.constant 0 : i32
    return %c0_i32, %c0_i32_0 : i32, i32
  }
  func.func @transform_4(%arg0: i32) -> (i32, i32) {
    %c0_i32 = arith.constant 0 : i32
    %c0_i32_0 = arith.constant 0 : i32
    %c0_i32_1 = arith.constant 0 : i32
    return %c0_i32, %c0_i32_0 : i32, i32
  }
  func.func @transform_5(%arg0: i32) -> (i32, i32) {
    %c0_i32 = arith.constant 0 : i32
    %c0_i32_0 = arith.constant 0 : i32
    %c0_i32_1 = arith.constant 0 : i32
    return %c0_i32, %c0_i32_0 : i32, i32
  }
  func.func @transform_6(%arg0: i32) -> (i32, i32) {
    %c0_i32 = arith.constant 0 : i32
    %c0_i32_0 = arith.constant 0 : i32
    %c0_i32_1 = arith.constant 0 : i32
    return %c0_i32, %c0_i32_0 : i32, i32
  }
  func.func @transform_7(%arg0: i32) -> (i32, i32) {
    %c0_i32 = arith.constant 0 : i32
    %c0_i32_0 = arith.constant 0 : i32
    %c0_i32_1 = arith.constant 0 : i32
    return %c0_i32, %c0_i32_0 : i32, i32
  }
  func.func @transform_8(%arg0: i32) -> (i32, i32) {
    %c0_i32 = arith.constant 0 : i32
    %c0_i32_0 = arith.constant 0 : i32
    %c0_i32_1 = arith.constant 0 : i32
    return %c0_i32, %c0_i32_0 : i32, i32
  }
  func.func @transform_9(%arg0: i32) -> (i32, i32) {
    %c0_i32 = arith.constant 0 : i32
    %c0_i32_0 = arith.constant 0 : i32
    return %arg0, %c0_i32 : i32, i32
  }
}

</mosaic_0001>

<bundles_post_ra>
// kernel: tpu_custom_call.1
= control target key start
LH: loop header
LB: loop body
LE: loop exit
PB: predicated region body
PF: predicated region fallthrough
CT: control target
= control target key end

     0   :  { %s6990_s0 = inlined_call_operand.vmem [shape: bf16[256,784], index: 0, kind: input, shape index: {}]   ;;  %s6991_s1 = inlined_call_operand.vmem [shape: bf16[784,512], index: 1, kind: input, shape index: {}]   ;;  %s6992_s2 = inlined_call_operand.hbm [shape: f32[1,512], index: 2, kind: input, shape index: {}]   ;;  %s6993_s3 = inlined_call_operand.hbm [shape: bf16[512,256], index: 3, kind: input, shape index: {}]   ;;  %s6994_s4 = inlined_call_operand.vmem [shape: f32[1,256], index: 4, kind: input, shape index: {}]   ;;  %s6995_s5 = inlined_call_operand.vmem [shape: bf16[256,128], index: 5, kind: input, shape index: {}]   ;;  %s6996_s6 = inlined_call_operand.hbm [shape: f32[1,128], index: 6, kind: input, shape index: {}]   ;;  %s6997_s7 = inlined_call_operand.hbm [shape: bf16[1,128], index: 7, kind: input, shape index: {}]   ;;  %s6998_s8 = inlined_call_operand.<no memory space> [shape: f32[1,1], index: 8, kind: input, shape index: {}]   ;;  %s6999_s9 = inlined_call_operand.vmem [shape: f32[256,1], index: 9, kind: output, shape index: {}]  }
   0x1   :  { %v14_v0 = vstv %s6998_s8 }
   0x2   :  { %15 = vst [vmem:[#allocation2] sm:$0x1] %v14_v0 }
   0x3   :  { %16 = vsyncpa [#allocation4], 0 }
   0x4   :  { %17 = vsyncpa [#allocation6], 0 }
   0x5   :  { %18 = vsyncpa [#allocation9], 0  ;;  %s5787_s11 = smov 0  }
   0x6 LB: > { %s5727_s12 = smov [#allocation5]   ;;  %s4295_s14 = sadd.s32 4294967295, %s5725_s11   ;;  %s5725_s11 = sphi %s5787_s11, %s24_s11  }
   0x7   : > { %s275_s13 = sshll.u32 %s5727_s12, 4  ;;  %p4297_p0 = scmp.ge.s32.totalorder %s5725_s11, 1  ;;  %s5801_s13 = int_to_ptr.vmem [resolvable:$true] %s275_s13 }
   0x8   : > { %p249_p1 = scmp.lt.s32.totalorder %s5725_s11, 3  ;;  %p5797_p2 = scmp.eq.s32.totalorder %s4295_s14, 0 }
   0x9   : > { %s5728_s16 = smov [#allocation3]   ;;  %s5729_s19 = smov [#allocation7]  }
   0xa   : > { %s7003_s8 = scalar_select %p5797_p2, 1, 0 }
   0xb   : > { %p5803_p3 = pnand %p4297_p0, %p249_p1  ;;  %s265_s17 = sshll.u32 %s5728_s16, 4  ;;  %s5809_s17 = int_to_ptr.vmem [resolvable:$true] %s265_s17 }
   0xc   : > { %s295_s20 = sshll.u32 %s5729_s19, 4  ;;  %s5730_s21 = smov [#allocation8]   ;;  %s5817_s20 = int_to_ptr.vmem [resolvable:$true] %s295_s20 }
   0xd   : > { %s7004_s15 = scalar_select %p5803_p3, 1, 0 }
   0xe   : > { %p5065_p4 = pneg %p5803_p3  ;;  %s5819_s22 = sshll.u32 %s5730_s21, 4  ;;  %s307_s22 = int_to_ptr.vmem [resolvable:$true] %s5819_s22 }
   0xf   : > { %s5595_s25 = scalar_lea.hbm %s6993_s3, 8192 }
  0x10   : > { %p5813_p5 = pnand %p5797_p2, %p5065_p4  ;;  %p5596_p6 = scmp.ne.s32.totalorder %s6993_s3, %s5595_s25 }
  0x11   : > { %p5602_p10 = scmp.lt.u32.totalorder %s5595_s25, %s6993_s3 }
  0x12   : > { %p5829_p7 = pneg %p5813_p5 }
  0x14   : > { %p5598_p8 = pnand %p5829_p7, %p5596_p6 }
  0x16   : > { %p5599_p9 = pneg %p5598_p8 }
  0x18   : > { %p5604_p11 = pnand %p5602_p10, %p5599_p9 }
  0x1a   : > { %5607 = shalt.err (!%p5604_p11)
}
  0x1b   : > { %s5608_s10 = scalar_lea.vmem %s5801_s13, 8192  ;;  %p5616_p1 = scmp.lt.s32.totalorder %s5801_s13, %s5801_s13 }
  0x1c   : > { %p5609_p12 = scmp.ne.s32.totalorder %s5801_s13, %s5608_s10  ;;  %p5617_p4 = scmp.lt.s32.totalorder %s5608_s10, %s5608_s10 }
  0x1e   : > { %p5611_p13 = pnand %p5609_p12, %p5829_p7  ;;  %p5618_p6 = por %p5617_p4, %p5616_p1 }
  0x20   : > { %p5612_p0 = pneg %p5611_p13 }
  0x22   : > { %p5619_p8 = pnand %p5618_p6, %p5612_p0 }
  0x24   : > { %5622 = shalt.err (!%p5619_p8)
}
  0x25   : > { %s5731_s12 = smov 128   ;;  %s5732_s16 = smov 8  }
  0x26   : > { %5071 = dma.hbm_to_vmem [thread:$0]  (!%p5813_p5), %s6993_s3, 8192, %s5801_s13, [#allocation6], %s5731_s12, %s5731_s12, %s5732_s16  }
  0x27   : > { %s5623_s25 = scalar_lea.hbm %s6992_s2, 64 }
  0x28   : > { %p5624_p9 = scmp.ne.s32.totalorder %s6992_s2, %s5623_s25  ;;  %p5630_p12 = scmp.lt.u32.totalorder %s5623_s25, %s6992_s2 }
  0x2a   : > { %p5626_p10 = pnand %p5624_p9, %p5829_p7 }
  0x2c   : > { %p5627_p11 = pneg %p5626_p10 }
  0x2e   : > { %p5632_p13 = pnand %p5630_p12, %p5627_p11 }
  0x30   : > { %5635 = shalt.err (!%p5632_p13)
}
  0x31   : > { %s5636_s13 = scalar_lea.vmem %s5809_s17, 64  ;;  %p5644_p6 = scmp.lt.s32.totalorder %s5809_s17, %s5809_s17 }
  0x32   : > { %p5637_p0 = scmp.ne.s32.totalorder %s5809_s17, %s5636_s13  ;;  %p5645_p8 = scmp.lt.s32.totalorder %s5636_s13, %s5636_s13 }
  0x34   : > { %p5639_p1 = pnand %p5637_p0, %p5829_p7  ;;  %p5646_p9 = por %p5645_p8, %p5644_p6 }
  0x36   : > { %p5640_p4 = pneg %p5639_p1 }
  0x38   : > { %p5647_p10 = pnand %p5646_p9, %p5640_p4 }
  0x3a   : > { %5650 = shalt.err (!%p5647_p10)
}
  0x3b   : > { %5068 = dma.hbm_to_vmem [thread:$0]  (!%p5813_p5), %s6992_s2, 64, %s5809_s17, [#allocation4]  }
  0x3c   : > { %s5651_s21 = scalar_lea.hbm %s6996_s6, 16 }
  0x3d   : > { %p5652_p11 = scmp.ne.s32.totalorder %s6996_s6, %s5651_s21  ;;  %p5658_p0 = scmp.lt.u32.totalorder %s5651_s21, %s6996_s6 }
  0x3f   : > { %p5654_p12 = pnand %p5652_p11, %p5829_p7 }
  0x41   : > { %p5655_p13 = pneg %p5654_p12 }
  0x43   : > { %p5660_p1 = pnand %p5658_p0, %p5655_p13 }
  0x45   : > { %5663 = shalt.err (!%p5660_p1)
}
  0x46   : > { %s5664_s17 = scalar_lea.vmem %s5817_s20, 16  ;;  %s5671_s27 = scalar_lea.vmem %s5817_s20, 32 }
  0x47   : > { %p5665_p4 = scmp.ne.s32.totalorder %s5817_s20, %s5664_s17  ;;  %p5672_p9 = scmp.lt.s32.totalorder %s5817_s20, %s5817_s20 }
  0x48   : > { %p5673_p10 = scmp.lt.s32.totalorder %s5671_s27, %s5664_s17 }
  0x49   : > { %p5667_p6 = pnand %p5665_p4, %p5829_p7 }
  0x4a   : > { %p5674_p11 = por %p5673_p10, %p5672_p9 }
  0x4b   : > { %p5668_p8 = pneg %p5667_p6 }
  0x4d   : > { %p5675_p12 = pnand %p5674_p11, %p5668_p8 }
  0x4f   : > { %5678 = shalt.err (!%p5675_p12)
}
  0x50   : > { %5074 = dma.hbm_to_vmem [thread:$0]  (!%p5813_p5), %s6996_s6, 16, %s5817_s20, [#allocation6]  }
  0x51   : > { %s5679_s12 = scalar_lea.hbm %s6997_s7, 16 }
  0x52   : > { %p5680_p13 = scmp.ne.s32.totalorder %s6997_s7, %s5679_s12  ;;  %p5686_p4 = scmp.lt.u32.totalorder %s5679_s12, %s6997_s7 }
  0x54   : > { %p5682_p0 = pnand %p5680_p13, %p5829_p7 }
  0x56   : > { %p5683_p1 = pneg %p5682_p0 }
  0x58   : > { %p5688_p6 = pnand %p5686_p4, %p5683_p1 }
  0x5a   : > { %5691 = shalt.err (!%p5688_p6)
}
  0x5b   : > { %s5692_s24 = scalar_lea.vmem %s307_s22, 16  ;;  %s5699_s20 = scalar_lea.vmem %s307_s22, 32 }
  0x5c   : > { %p5693_p8 = scmp.ne.s32.totalorder %s307_s22, %s5692_s24  ;;  %p5700_p11 = scmp.lt.s32.totalorder %s307_s22, %s307_s22 }
  0x5d   : > { %p5701_p12 = scmp.lt.s32.totalorder %s5699_s20, %s5692_s24 }
  0x5e   : > { %p5695_p9 = pnand %p5693_p8, %p5829_p7 }
  0x5f   : > { %p5702_p2 = por %p5701_p12, %p5700_p11 }
  0x60   : > { %p5696_p10 = pneg %p5695_p9 }
  0x62   : > { %p5703_p3 = pnand %p5702_p2, %p5696_p10 }
  0x64   : > { %5706 = shalt.err (!%p5703_p3)
}
  0x65   : > { %5077 = dma.hbm_to_vmem [thread:$0]  (!%p5813_p5), %s6997_s7, 16, %s307_s22, [#allocation9]  }
  0x66   : > { %p7007_p13 = scmp.ne.s32.totalorder %s7004_s15, 0 }
  0x67   : > { %p7008_p0 = scmp.ne.s32.totalorder (!%p7007_p13), %s7003_s8, 0 }
  0x68   : > { %332 = sbr.rel (%p7007_p13) target bundleno = 1251 (0x4e3), region = 56 }
  0x6f   : > { %5712 = dma.done.wait (%p7008_p0), [#allocation4], 64  }
  0x70   : > { %5714 = vsyncadd (%p7008_p0), [#allocation4], 4294967232 }
  0x71   : > { %5716 = dma.done.wait (%p7008_p0), [#allocation6], 8208  }
  0x72   : > { %5718 = vsyncadd (%p7008_p0), [#allocation6], 4294959088 }
  0x73   : > { %5720 = dma.done.wait (%p7008_p0), [#allocation9], 16  }
  0x74   : > { %5722 = vsyncadd (%p7008_p0), [#allocation9], 4294967280  ;;  %s4308_s15 = sshll.u32 %s4295_s14, 4  ;;  %v5733_v1 = vmov 0   ;;  %v5101_v2 = vld [vmem:[%s6991_s1 + $0x4] ss:$16 sps:$4 sm:$0xff]  }
  0x75   : > { %2333 = vmatprep.mubr.bf16.mxu1 %v5733_v1  ;;  %p382_p2 = scmp.lt.s32.totalorder %s4308_s15, 31  ;;  %v5103_v3 = vld [vmem:[%s6991_s1 + $0x604] ss:$16 sps:$4 sm:$0xff]   ;;  %1962 = vmatprep.subr.bf16.mxu0 %v5101_v2  ;;  %v5105_v4 = vld [vmem:[%s6991_s1] ss:$16 sps:$4 sm:$0xff]   ;;  %vm1937_vm0 = vcmask 130048  }
  0x76   : > { %v5106_v5 = vld [vmem:[%s6991_s1 + $0x600] ss:$16 sps:$4 sm:$0xff]   ;;  %2301 = vmatprep.subr.bf16.mxu1 %v5103_v3  ;;  %v5107_v6 = vld [vmem:[%s6991_s1 + $0x24] ss:$16 sps:$4 sm:$0xff]   ;;  %1963 = vmatpush1.bf16.msra.mxu0 %v5105_v4  ;;  %v5110_v8 = vld [vmem:[%s6991_s1 + $0x8] ss:$16 sps:$4 sm:$0xff]  }
  0x77   : > { %s7010_s15 = smov (!%p382_p2, %s4308_s15), 31  ;;  %2302 = vmatpush1.bf16.msra.mxu1 %v5106_v5  ;;  %1964 = vmatprep.subr.bf16.mxu0 %v5107_v6  ;;  %v5112_v9 = vld [vmem:[%s6991_s1 + $0xc] ss:$16 sps:$4 sm:$0xff]   ;;  %v5113_v10 = vld [vmem:[%s6991_s1 + $0x20] ss:$16 sps:$4 sm:$0xff]  }
  0x78   : > { %s5048_s18 = smul.u32 28, %s7010_s15  ;;  %2414 = vmatprep.subr.bf16.mxu1 %v5112_v9  ;;  %v5114_v11 = vld [vmem:[%s6991_s1 + $0x44] ss:$16 sps:$4 sm:$0xff]   ;;  %v5116_v12 = vld [vmem:[%s6991_s1 + $0x28] ss:$16 sps:$4 sm:$0xff]   ;;  %s4311_s10 = sshll.u32 %s7010_s15, 3 }
  0x79   : > { %v5118_v13 = vld [vmem:[%s6991_s1 + $0x2c] ss:$16 sps:$4 sm:$0xff]   ;;  %v5119_v14 = vld [vmem:[%s6991_s1 + $0x40] ss:$16 sps:$4 sm:$0xff]   ;;  %v5120_v15 = vld [vmem:[%s6991_s1 + $0x64] ss:$16 sps:$4 sm:$0xff]   ;;  %s6953_s19 = scalar_lea.vmem %s6999_s9, %s4311_s10 }
  0x7a   : > { %s5945_s14 = scalar_lea.vmem %s6990_s0, %s5048_s18  ;;  %1965 = vmatpush1.bf16.msra.mxu0 %v5113_v10  ;;  %v5123_v17 = vld [vmem:[%s6991_s1 + $0x48] ss:$16 sps:$4 sm:$0xff]   ;;  %v5125_v18 = vld [vmem:[%s6991_s1 + $0x4c] ss:$16 sps:$4 sm:$0xff]   ;;  %v5126_v19 = vld [vmem:[%s6991_s1 + $0x60] ss:$16 sps:$4 sm:$0xff]  }
  0x7b   : > { %v5109_v7 = vld [vmem:[%s5945_s14 + $0x18] ss:$28 sps:$4 sm:$0xff]   ;;  %1966 = vmatprep.subr.bf16.mxu0 %v5114_v11  ;;  %v5122_v16 = vld [vmem:[%s5945_s14 + $0x50] ss:$28 sps:$4 sm:$0xff]   ;;  %v5135_v25 = vld [vmem:[%s5945_s14 + $0x88] ss:$28 sps:$4 sm:$0xff]  }
  0x7c   : > { %4564 = vmatmul.mubr.msk.bf16.vlgmr.msra.gmra.mrb[0].mxu1 %vm1937_vm0, %v5109_v7  ;;  %v5127_v20 = vld [vmem:[%s6991_s1 + $0x84] ss:$16 sps:$4 sm:$0xff]   ;;  %v5131_v21 = vld [vmem:[%s6991_s1 + $0x6c] ss:$16 sps:$4 sm:$0xff]   ;;  %v5129_v22 = vld [vmem:[%s6991_s1 + $0x68] ss:$16 sps:$4 sm:$0xff]  }
  0x7d   : > { %2415 = vmatpush1.bf16.msra.mxu1 %v5110_v8  ;;  %2343 = vmatprep.mubr.bf16.mxu1 %v5733_v1  ;;  %v5132_v23 = vld [vmem:[%s6991_s1 + $0x80] ss:$16 sps:$4 sm:$0xff]   ;;  %v5133_v24 = vld [vmem:[%s6991_s1 + $0xa4] ss:$16 sps:$4 sm:$0xff]   ;;  %v5138_v26 = vld [vmem:[%s6991_s1 + $0x8c] ss:$16 sps:$4 sm:$0xff]  }
  0x7e   : > { %2416 = vmatprep.subr.bf16.mxu1 %v5118_v13  ;;  %1967 = vmatpush1.bf16.msra.mxu0 %v5119_v14  ;;  %v5136_v27 = vld [vmem:[%s6991_s1 + $0x88] ss:$16 sps:$4 sm:$0xff]   ;;  %v5139_v28 = vld [vmem:[%s6991_s1 + $0xa0] ss:$16 sps:$4 sm:$0xff]   ;;  %v5140_v29 = vld [vmem:[%s6991_s1 + $0xc4] ss:$16 sps:$4 sm:$0xff]  }
  0x7f   : > { %1968 = vmatprep.subr.bf16.mxu0 %v5120_v15  ;;  %v5144_v30 = vld [vmem:[%s6991_s1 + $0xac] ss:$16 sps:$4 sm:$0xff]   ;;  %v5142_v31 = vld [vmem:[%s6991_s1 + $0xa8] ss:$16 sps:$4 sm:$0xff]   ;;  %v5145_v32 = vld [vmem:[%s6991_s1 + $0xc0] ss:$16 sps:$4 sm:$0xff]  }
  0x80   : > { %v5146_v33 = vld [vmem:[%s6991_s1 + $0xe4] ss:$16 sps:$4 sm:$0xff]   ;;  %v5151_v34 = vld [vmem:[%s6991_s1 + $0xcc] ss:$16 sps:$4 sm:$0xff]   ;;  %v5149_v36 = vld [vmem:[%s6991_s1 + $0xc8] ss:$16 sps:$4 sm:$0xff]  }
  0x81   : > { %2417 = vmatpush1.bf16.msra.mxu1 %v5116_v12  ;;  %v5148_v35 = vld [vmem:[%s5945_s14 + $0xc0] ss:$28 sps:$4 sm:$0xff]   ;;  %v5153_v38 = vld [vmem:[%s6991_s1 + $0x104] ss:$16 sps:$4 sm:$0xff]   ;;  %v5155_v40 = vld [vmem:[%s6991_s1 + $0xe8] ss:$16 sps:$4 sm:$0xff]  }
  0x82   : > { %2418 = vmatprep.subr.bf16.mxu1 %v5125_v18  ;;  %1969 = vmatpush1.bf16.msra.mxu0 %v5126_v19  ;;  %v5152_v37 = vld [vmem:[%s6991_s1 + $0xe0] ss:$16 sps:$4 sm:$0xff]   ;;  %v5157_v39 = vld [vmem:[%s6991_s1 + $0xec] ss:$16 sps:$4 sm:$0xff]   ;;  %v5159_v42 = vld [vmem:[%s6991_s1 + $0x124] ss:$16 sps:$4 sm:$0xff]  }
  0x83   : > { %1970 = vmatprep.subr.bf16.mxu0 %v5127_v20  ;;  %v5158_v41 = vld [vmem:[%s6991_s1 + $0x100] ss:$16 sps:$4 sm:$0xff]   ;;  %v5164_v43 = vld [vmem:[%s6991_s1 + $0x10c] ss:$16 sps:$4 sm:$0xff]   ;;  %v5161_v44 = vld [vmem:[%s5945_s14 + $0xf8] ss:$28 sps:$4 sm:$0xff]  }
  0x84   : > { %4565 = vmatmul.mubr.msk.bf16.gmra.mrb[4].mxu1 %vm1937_vm0, %v5122_v16  ;;  %v5162_v45 = vld [vmem:[%s6991_s1 + $0x108] ss:$16 sps:$4 sm:$0xff]   ;;  %v5165_v46 = vld [vmem:[%s6991_s1 + $0x120] ss:$16 sps:$4 sm:$0xff]   ;;  %v5166_v47 = vld [vmem:[%s6991_s1 + $0x144] ss:$16 sps:$4 sm:$0xff]  }
  0x85   : > { %2419 = vmatpush1.bf16.msra.mxu1 %v5123_v17  ;;  %2353 = vmatprep.mubr.bf16.mxu1 %v5733_v1  ;;  %v5170_v48 = vld [vmem:[%s6991_s1 + $0x12c] ss:$16 sps:$4 sm:$0xff]   ;;  %v5168_v49 = vld [vmem:[%s6991_s1 + $0x128] ss:$16 sps:$4 sm:$0xff]   ;;  %v5171_v50 = vld [vmem:[%s6991_s1 + $0x140] ss:$16 sps:$4 sm:$0xff]  }
  0x86   : > { %2420 = vmatprep.subr.bf16.mxu1 %v5131_v21  ;;  %1971 = vmatpush1.bf16.msra.mxu0 %v5132_v23  ;;  %v5172_v51 = vld [vmem:[%s6991_s1 + $0x164] ss:$16 sps:$4 sm:$0xff]   ;;  %v5177_v52 = vld [vmem:[%s6991_s1 + $0x14c] ss:$16 sps:$4 sm:$0xff]   ;;  %v5175_v54 = vld [vmem:[%s6991_s1 + $0x148] ss:$16 sps:$4 sm:$0xff]  }
  0x87   : > { %1972 = vmatprep.subr.bf16.mxu0 %v5133_v24  ;;  %v5174_v53 = vld [vmem:[%s5945_s14 + $0x130] ss:$28 sps:$4 sm:$0xff]   ;;  %v5179_v56 = vld [vmem:[%s6991_s1 + $0x184] ss:$16 sps:$4 sm:$0xff]   ;;  %v5181_v58 = vld [vmem:[%s6991_s1 + $0x168] ss:$16 sps:$4 sm:$0xff]  }
  0x88   : > { %v5178_v55 = vld [vmem:[%s6991_s1 + $0x160] ss:$16 sps:$4 sm:$0xff]   ;;  %v5183_v57 = vld [vmem:[%s6991_s1 + $0x16c] ss:$16 sps:$4 sm:$0xff]   ;;  %v5185_v60 = vld [vmem:[%s6991_s1 + $0x1a4] ss:$16 sps:$4 sm:$0xff]  }
  0x89   : > { %2421 = vmatpush1.bf16.msra.mxu1 %v5129_v22  ;;  %v5184_v59 = vld [vmem:[%s6991_s1 + $0x180] ss:$16 sps:$4 sm:$0xff]   ;;  %v5190_v61 = vld [vmem:[%s6991_s1 + $0x18c] ss:$16 sps:$4 sm:$0xff]   ;;  %v5187_v62 = vld [vmem:[%s5945_s14 + $0x168] ss:$28 sps:$4 sm:$0xff]  }
  0x8a   : > { %2422 = vmatprep.subr.bf16.mxu1 %v5138_v26  ;;  %1973 = vmatpush1.bf16.msra.mxu0 %v5139_v28  ;;  %v5188_v63 = vld [vmem:[%s6991_s1 + $0x188] ss:$16 sps:$4 sm:$0xff]   ;;  %v5191_v0 = vld [vmem:[%s6991_s1 + $0x1a0] ss:$16 sps:$4 sm:$0xff]   ;;  %v5192_v3 = vld [vmem:[%s6991_s1 + $0x1c4] ss:$16 sps:$4 sm:$0xff]  }
  0x8b   : > { %1974 = vmatprep.subr.bf16.mxu0 %v5140_v29  ;;  %v5207_v2 = vld [vmem:[%s5945_s14 + $0x4] ss:$28 sps:$4 sm:$0xff]   ;;  %v5196_v4 = vld [vmem:[%s6991_s1 + $0x1ac] ss:$16 sps:$4 sm:$0xff]   ;;  %v5194_v5 = vld [vmem:[%s6991_s1 + $0x1a8] ss:$16 sps:$4 sm:$0xff]  }
  0x8c   : > { %4566 = vmatmul.mubr.msk.bf16.gmra.mrb[8].mxu1 %vm1937_vm0, %v5135_v25  ;;  %1994 = vmatprep.mubr.bf16.mxu0 %v5207_v2  ;;  %v5197_v6 = vld [vmem:[%s6991_s1 + $0x1c0] ss:$16 sps:$4 sm:$0xff]   ;;  %v5198_v7 = vld [vmem:[%s6991_s1 + $0x1e4] ss:$16 sps:$4 sm:$0xff]   ;;  %v5203_v8 = vld [vmem:[%s6991_s1 + $0x1cc] ss:$16 sps:$4 sm:$0xff]  }
  0x8d   : > { %2423 = vmatpush1.bf16.msra.mxu1 %v5136_v27  ;;  %2363 = vmatprep.mubr.bf16.mxu1 %v5733_v1  ;;  %v5200_v9 = vld [vmem:[%s5945_s14 + $0x1a0] ss:$28 sps:$4 sm:$0xff]   ;;  %v5201_v10 = vld [vmem:[%s6991_s1 + $0x1c8] ss:$16 sps:$4 sm:$0xff]   ;;  %v5210_v12 = vld [vmem:[%s6991_s1 + $0x204] ss:$16 sps:$4 sm:$0xff]  }
  0x8e   : > { %2424 = vmatprep.subr.bf16.mxu1 %v5144_v30  ;;  %1975 = vmatpush1.bf16.msra.mxu0 %v5145_v32  ;;  %v5204_v11 = vld [vmem:[%s6991_s1 + $0x1e0] ss:$16 sps:$4 sm:$0xff]   ;;  %v5213_v13 = vld [vmem:[%s6991_s1 + $0x1ec] ss:$16 sps:$4 sm:$0xff]   ;;  %v5211_v16 = vld [vmem:[%s6991_s1 + $0x1e8] ss:$16 sps:$4 sm:$0xff]  }
  0x8f   : > { %1976 = vmatprep.subr.bf16.mxu0 %v5146_v33  ;;  %v5205_v14 = vld [vmem:[%s5945_s14] ss:$28 sps:$4 sm:$0xff]   ;;  %v5216_v17 = vld [vmem:[%s6991_s1 + $0x224] ss:$16 sps:$4 sm:$0xff]   ;;  %v5217_v21 = vld [vmem:[%s6991_s1 + $0x208] ss:$16 sps:$4 sm:$0xff]  }
  0x90   : > { %v5208_v15 = vld [vmem:[%s6991_s1 + $0x200] ss:$16 sps:$4 sm:$0xff]   ;;  %v5219_v18 = vld [vmem:[%s6991_s1 + $0x20c] ss:$16 sps:$4 sm:$0xff]   ;;  %v5225_v22 = vld [vmem:[%s6991_s1 + $0x244] ss:$16 sps:$4 sm:$0xff]  }
  0x91   : > { %2425 = vmatpush1.bf16.msra.mxu1 %v5142_v31  ;;  %v5220_v19 = vld [vmem:[%s5945_s14 + $0x3c] ss:$28 sps:$4 sm:$0xff]   ;;  %v5214_v20 = vld [vmem:[%s6991_s1 + $0x220] ss:$16 sps:$4 sm:$0xff]   ;;  %v5231_v27 = vld [vmem:[%s6991_s1 + $0x264] ss:$16 sps:$4 sm:$0xff]  }
  0x92   : > { %2426 = vmatprep.subr.bf16.mxu1 %v5151_v34  ;;  %1977 = vmatpush1.bf16.msra.mxu0 %v5152_v37  ;;  %v5228_v23 = vld [vmem:[%s6991_s1 + $0x22c] ss:$16 sps:$4 sm:$0xff]   ;;  %v5222_v24 = vld [vmem:[%s5945_s14 + $0x38] ss:$28 sps:$4 sm:$0xff]   ;;  %v5223_v25 = vld [vmem:[%s6991_s1 + $0x240] ss:$16 sps:$4 sm:$0xff]  }
  0x93   : > { %1978 = vmatprep.subr.bf16.mxu0 %v5153_v38  ;;  %v5226_v26 = vld [vmem:[%s6991_s1 + $0x228] ss:$16 sps:$4 sm:$0xff]   ;;  %v5234_v28 = vld [vmem:[%s6991_s1 + $0x24c] ss:$16 sps:$4 sm:$0xff]   ;;  %v5235_v29 = vld [vmem:[%s5945_s14 + $0x74] ss:$28 sps:$4 sm:$0xff]  }
  0x94   : > { %4567 = vmatmul.mubr.msk.bf16.gmra.mrb[12].mxu1 %vm1937_vm0, %v5148_v35  ;;  %v5229_v30 = vld [vmem:[%s6991_s1 + $0x260] ss:$16 sps:$4 sm:$0xff]   ;;  %v5232_v31 = vld [vmem:[%s6991_s1 + $0x248] ss:$16 sps:$4 sm:$0xff]   ;;  %v5240_v32 = vld [vmem:[%s6991_s1 + $0x284] ss:$16 sps:$4 sm:$0xff]  }
  0x95   : > { %2427 = vmatpush1.bf16.msra.mxu1 %v5149_v36  ;;  %2373 = vmatprep.mubr.bf16.mxu1 %v5733_v1  ;;  %v5243_v33 = vld [vmem:[%s6991_s1 + $0x26c] ss:$16 sps:$4 sm:$0xff]   ;;  %v5238_v35 = vld [vmem:[%s6991_s1 + $0x280] ss:$16 sps:$4 sm:$0xff]   ;;  %v5241_v36 = vld [vmem:[%s6991_s1 + $0x268] ss:$16 sps:$4 sm:$0xff]  }
  0x96   : > { %2428 = vmatprep.subr.bf16.mxu1 %v5157_v39  ;;  %1979 = vmatpush1.bf16.msra.mxu0 %v5158_v41  ;;  %v5237_v34 = vld [vmem:[%s5945_s14 + $0x70] ss:$28 sps:$4 sm:$0xff]   ;;  %v5246_v37 = vld [vmem:[%s6991_s1 + $0x2a4] ss:$16 sps:$4 sm:$0xff]   ;;  %v5247_v41 = vld [vmem:[%s6991_s1 + $0x288] ss:$16 sps:$4 sm:$0xff]  }
  0x97   : > { %1980 = vmatprep.subr.bf16.mxu0 %v5159_v42  ;;  %v5249_v38 = vld [vmem:[%s6991_s1 + $0x28c] ss:$16 sps:$4 sm:$0xff]   ;;  %v5255_v42 = vld [vmem:[%s6991_s1 + $0x2c4] ss:$16 sps:$4 sm:$0xff]  }
  0x98   : > { %v5250_v39 = vld [vmem:[%s5945_s14 + $0xac] ss:$28 sps:$4 sm:$0xff]  }
  0x99   : > { %2429 = vmatpush1.bf16.msra.mxu1 %v5155_v40  ;;  %v5244_v40 = vld [vmem:[%s6991_s1 + $0x2a0] ss:$16 sps:$4 sm:$0xff]  }
  0x9a   : > { %2430 = vmatprep.subr.bf16.mxu1 %v5164_v43  ;;  %1981 = vmatpush1.bf16.msra.mxu0 %v5165_v46  ;;  %v5258_v43 = vld [vmem:[%s6991_s1 + $0x2ac] ss:$16 sps:$4 sm:$0xff]   ;;  %v5256_v46 = vld [vmem:[%s6991_s1 + $0x2a8] ss:$16 sps:$4 sm:$0xff]  }
  0x9b   : > { %1982 = vmatprep.subr.bf16.mxu0 %v5166_v47  ;;  %v5261_v47 = vld [vmem:[%s6991_s1 + $0x2e4] ss:$16 sps:$4 sm:$0xff]  }
  0x9c   : > { %4568 = vmatmul.mubr.msk.bf16.gmra.mrb[16].mxu1 %vm1937_vm0, %v5161_v44  ;;  %v5252_v44 = vld [vmem:[%s5945_s14 + $0xa8] ss:$28 sps:$4 sm:$0xff]  }
  0x9d   : > { %2431 = vmatpush1.bf16.msra.mxu1 %v5162_v45  ;;  %2383 = vmatprep.mubr.bf16.mxu1 %v5733_v1  ;;  %v5253_v45 = vld [vmem:[%s6991_s1 + $0x2c0] ss:$16 sps:$4 sm:$0xff]  }
  0x9e   : > { %2432 = vmatprep.subr.bf16.mxu1 %v5170_v48  ;;  %1983 = vmatpush1.bf16.msra.mxu0 %v5171_v50  ;;  %v5264_v48 = vld [vmem:[%s6991_s1 + $0x2cc] ss:$16 sps:$4 sm:$0xff]   ;;  %v5259_v50 = vld [vmem:[%s6991_s1 + $0x2e0] ss:$16 sps:$4 sm:$0xff]  }
  0x9f   : > { %1984 = vmatprep.subr.bf16.mxu0 %v5172_v51  ;;  %v5262_v51 = vld [vmem:[%s6991_s1 + $0x2c8] ss:$16 sps:$4 sm:$0xff]  }
  0xa1   : > { %2433 = vmatpush1.bf16.msra.mxu1 %v5168_v49  ;;  %v5265_v49 = vld [vmem:[%s5945_s14 + $0xe4] ss:$28 sps:$4 sm:$0xff]  }
  0xa2   : > { %2434 = vmatprep.subr.bf16.mxu1 %v5177_v52  ;;  %1985 = vmatpush1.bf16.msra.mxu0 %v5178_v55  ;;  %v5270_v52 = vld [vmem:[%s6991_s1 + $0x304] ss:$16 sps:$4 sm:$0xff]   ;;  %v5268_v55 = vld [vmem:[%s6991_s1 + $0x300] ss:$16 sps:$4 sm:$0xff]  }
  0xa3   : > { %1986 = vmatprep.subr.bf16.mxu0 %v5179_v56  ;;  %v5271_v56 = vld [vmem:[%s6991_s1 + $0x2e8] ss:$16 sps:$4 sm:$0xff]  }
  0xa4   : > { %4569 = vmatmul.mubr.msk.bf16.gmra.mrb[20].mxu1 %vm1937_vm0, %v5174_v53  ;;  %v5273_v53 = vld [vmem:[%s6991_s1 + $0x2ec] ss:$16 sps:$4 sm:$0xff]  }
  0xa5   : > { %2435 = vmatpush1.bf16.msra.mxu1 %v5175_v54  ;;  %2393 = vmatprep.mubr.bf16.mxu1 %v5733_v1  ;;  %v5267_v54 = vld [vmem:[%s5945_s14 + $0xe0] ss:$28 sps:$4 sm:$0xff]  }
  0xa6   : > { %2436 = vmatprep.subr.bf16.mxu1 %v5183_v57  ;;  %1987 = vmatpush1.bf16.msra.mxu0 %v5184_v59  ;;  %v5276_v57 = vld [vmem:[%s6991_s1 + $0x324] ss:$16 sps:$4 sm:$0xff]   ;;  %v5280_v59 = vld [vmem:[%s5945_s14 + $0x11c] ss:$28 sps:$4 sm:$0xff]  }
  0xa7   : > { %1988 = vmatprep.subr.bf16.mxu0 %v5185_v60  ;;  %v5274_v60 = vld [vmem:[%s6991_s1 + $0x320] ss:$16 sps:$4 sm:$0xff]  }
  0xa9   : > { %2437 = vmatpush1.bf16.msra.mxu1 %v5181_v58  ;;  %v5279_v58 = vld [vmem:[%s6991_s1 + $0x30c] ss:$16 sps:$4 sm:$0xff]  }
  0xaa   : > { %2438 = vmatprep.subr.bf16.mxu1 %v5190_v61  ;;  %1989 = vmatpush1.bf16.msra.mxu0 %v5191_v0  ;;  %v5277_v61 = vld [vmem:[%s6991_s1 + $0x308] ss:$16 sps:$4 sm:$0xff]  }
  0xab   : > { %1990 = vmatprep.subr.bf16.mxu0 %v5192_v3  ;;  %v5282_v0 = vld [vmem:[%s5945_s14 + $0x118] ss:$28 sps:$4 sm:$0xff]  }
  0xac   : > { %4570 = vmatmul.mubr.msk.bf16.gmra.mrb[24].mxu1 %vm1937_vm0, %v5187_v62  ;;  %v5285_v62 = vld [vmem:[%s6991_s1 + $0x344] ss:$16 sps:$4 sm:$0xff]   ;;  %v5286_v3 = vld [vmem:[%s6991_s1 + $0x328] ss:$16 sps:$4 sm:$0xff]  }
  0xad   : > { %2439 = vmatpush1.bf16.msra.mxu1 %v5188_v63  ;;  %2403 = vmatprep.mubr.bf16.mxu1 %v5733_v1  ;;  %v5288_v63 = vld [vmem:[%s6991_s1 + $0x32c] ss:$16 sps:$4 sm:$0xff]  }
  0xae   : > { %2440 = vmatprep.subr.bf16.mxu1 %v5196_v4  ;;  %1991 = vmatpush1.bf16.msra.mxu0 %v5197_v6  ;;  %v5291_v4 = vld [vmem:[%s6991_s1 + $0x364] ss:$16 sps:$4 sm:$0xff]  }
  0xaf   : > { %1992 = vmatprep.subr.bf16.mxu0 %v5198_v7  ;;  %v5295_v6 = vld [vmem:[%s5945_s14 + $0x154] ss:$28 sps:$4 sm:$0xff]  }
  0xb0   : > { %v5289_v7 = vld [vmem:[%s6991_s1 + $0x360] ss:$16 sps:$4 sm:$0xff]  }
  0xb1   : > { %2441 = vmatpush1.bf16.msra.mxu1 %v5194_v5  ;;  %v5294_v5 = vld [vmem:[%s6991_s1 + $0x34c] ss:$16 sps:$4 sm:$0xff]  }
  0xb2   : > { %2442 = vmatprep.subr.bf16.mxu1 %v5203_v8  ;;  %1993 = vmatpush1.bf16.msra.mxu0 %v5204_v11  ;;  %v5292_v8 = vld [vmem:[%s6991_s1 + $0x348] ss:$16 sps:$4 sm:$0xff]   ;;  %v5297_v11 = vld [vmem:[%s5945_s14 + $0x150] ss:$28 sps:$4 sm:$0xff]  }
  0xb3   : > { %2075 = vmatprep.subr.bf16.mxu0 %v5210_v12  ;;  %v5298_v12 = vld [vmem:[%s6991_s1 + $0x380] ss:$16 sps:$4 sm:$0xff]  }
  0xb4   : > { %4571 = vmatmul.mubr.msk.bf16.gmra.mrb[28].mxu1 %vm1937_vm0, %v5200_v9  ;;  %v5300_v9 = vld [vmem:[%s6991_s1 + $0x384] ss:$16 sps:$4 sm:$0xff]  }
  0xb5   : > { %2443 = vmatpush1.bf16.msra.mxu1 %v5201_v10  ;;  %2446 = vmatprep.mubr.bf16.mxu1 %v5207_v2  ;;  %v5283_v2 = vld [vmem:[%s6991_s1 + $0x340] ss:$16 sps:$4 sm:$0xff]   ;;  %v5303_v10 = vld [vmem:[%s6991_s1 + $0x36c] ss:$16 sps:$4 sm:$0xff]  }
  0xb6   : > { %2444 = vmatprep.subr.bf16.mxu1 %v5213_v13  ;;  %1995 = vmatmul.mubr.bf16.vlgmr.msra.gmra.mrb[0].mxu0 %v5205_v14  ;;  %v5301_v13 = vld [vmem:[%s6991_s1 + $0x368] ss:$16 sps:$4 sm:$0xff]  }
  0xb7   : > { %2076 = vmatpush1.bf16.msra.mxu0 %v5208_v15  ;;  %2004 = vmatprep.mubr.bf16.mxu0 %v5220_v19  ;;  %v5309_v15 = vld [vmem:[%s6991_s1 + $0x38c] ss:$16 sps:$4 sm:$0xff]  }
  0xb8   : > { %2077 = vmatprep.subr.bf16.mxu0 %v5216_v17  ;;  %v5304_v17 = vld [vmem:[%s6991_s1 + $0x3a0] ss:$16 sps:$4 sm:$0xff]  }
  0xb9   : > { %2445 = vmatpush1.bf16.msra.mxu1 %v5211_v16  ;;  %v5310_v16 = vld [vmem:[%s5945_s14 + $0x18c] ss:$28 sps:$4 sm:$0xff]  }
  0xba   : > { %2527 = vmatprep.subr.bf16.mxu1 %v5219_v18  ;;  %v5307_v18 = vld [vmem:[%s6991_s1 + $0x388] ss:$16 sps:$4 sm:$0xff]  }
  0xbb   : > { %2078 = vmatpush1.bf16.msra.mxu0 %v5214_v20  ;;  %v5318_v20 = vld [vmem:[%s6991_s1 + $0x3ac] ss:$16 sps:$4 sm:$0xff]  }
  0xbc   : > { %2447 = vmatmul.mubr.bf16.vlgmr.msra.gmra.mrb[32].mxu1 %v5205_v14  ;;  %2079 = vmatprep.subr.bf16.mxu0 %v5225_v22  ;;  %v5306_v14 = vld [vmem:[%s6991_s1 + $0x3a4] ss:$16 sps:$4 sm:$0xff]   ;;  %v5313_v22 = vld [vmem:[%s6991_s1 + $0x3c0] ss:$16 sps:$4 sm:$0xff]  }
  0xbd   : > { %2528 = vmatpush1.bf16.msra.mxu1 %v5217_v21  ;;  %2456 = vmatprep.mubr.bf16.mxu1 %v5220_v19  ;;  %v5315_v19 = vld [vmem:[%s6991_s1 + $0x3c4] ss:$16 sps:$4 sm:$0xff]  }
  0xbe   : > { %2529 = vmatprep.subr.bf16.mxu1 %v5228_v23  ;;  %2005 = vmatmul.mubr.bf16.gmra.mrb[4].mxu0 %v5222_v24  ;;  %v5312_v21 = vld [vmem:[%s5945_s14 + $0x188] ss:$28 sps:$4 sm:$0xff]  }
  0xbf   : > { %2080 = vmatpush1.bf16.msra.mxu0 %v5223_v25  ;;  %2014 = vmatprep.mubr.bf16.mxu0 %v5235_v29  ;;  %v5316_v23 = vld [vmem:[%s6991_s1 + $0x3a8] ss:$16 sps:$4 sm:$0xff]   ;;  %v5324_v25 = vld [vmem:[%s6991_s1 + $0x3cc] ss:$16 sps:$4 sm:$0xff]  }
  0xc0   : > { %2081 = vmatprep.subr.bf16.mxu0 %v5231_v27  ;;  %v5319_v27 = vld [vmem:[%s6991_s1 + $0x3e0] ss:$16 sps:$4 sm:$0xff]  }
  0xc1   : > { %2530 = vmatpush1.bf16.msra.mxu1 %v5226_v26  ;;  %v5327_v26 = vld [vmem:[%s5945_s14 + $0xc] ss:$28 sps:$4 sm:$0xff]  }
  0xc2   : > { %2531 = vmatprep.subr.bf16.mxu1 %v5234_v28  ;;  %v5322_v28 = vld [vmem:[%s6991_s1 + $0x3c8] ss:$16 sps:$4 sm:$0xff]  }
  0xc3   : > { %2082 = vmatpush1.bf16.msra.mxu0 %v5229_v30  ;;  %v5333_v30 = vld [vmem:[%s6991_s1 + $0x3ec] ss:$16 sps:$4 sm:$0xff]  }
  0xc4   : > { %2457 = vmatmul.mubr.bf16.gmra.mrb[36].mxu1 %v5222_v24  ;;  %2083 = vmatprep.subr.bf16.mxu0 %v5240_v32  ;;  %v5321_v24 = vld [vmem:[%s6991_s1 + $0x3e4] ss:$16 sps:$4 sm:$0xff]   ;;  %v5328_v32 = vld [vmem:[%s6991_s1 + $0x400] ss:$16 sps:$4 sm:$0xff]  }
  0xc5   : > { %2532 = vmatpush1.bf16.msra.mxu1 %v5232_v31  ;;  %2466 = vmatprep.mubr.bf16.mxu1 %v5235_v29  ;;  %v5330_v29 = vld [vmem:[%s6991_s1 + $0x404] ss:$16 sps:$4 sm:$0xff]  }
  0xc6   : > { %2533 = vmatprep.subr.bf16.mxu1 %v5243_v33  ;;  %2015 = vmatmul.mubr.bf16.gmra.mrb[8].mxu0 %v5237_v34  ;;  %v5325_v31 = vld [vmem:[%s5945_s14 + $0x8] ss:$28 sps:$4 sm:$0xff]  }
  0xc7   : > { %2084 = vmatpush1.bf16.msra.mxu0 %v5238_v35  ;;  %2024 = vmatprep.mubr.bf16.mxu0 %v5250_v39  ;;  %v5331_v33 = vld [vmem:[%s6991_s1 + $0x3e8] ss:$16 sps:$4 sm:$0xff]   ;;  %v5339_v35 = vld [vmem:[%s6991_s1 + $0x40c] ss:$16 sps:$4 sm:$0xff]  }
  0xc8   : > { %2085 = vmatprep.subr.bf16.mxu0 %v5246_v37  ;;  %v5334_v37 = vld [vmem:[%s6991_s1 + $0x420] ss:$16 sps:$4 sm:$0xff]  }
  0xc9   : > { %2534 = vmatpush1.bf16.msra.mxu1 %v5241_v36  ;;  %v5340_v36 = vld [vmem:[%s5945_s14 + $0x44] ss:$28 sps:$4 sm:$0xff]  }
  0xca   : > { %2535 = vmatprep.subr.bf16.mxu1 %v5249_v38  ;;  %v5337_v38 = vld [vmem:[%s6991_s1 + $0x408] ss:$16 sps:$4 sm:$0xff]  }
  0xcb   : > { %2086 = vmatpush1.bf16.msra.mxu0 %v5244_v40  ;;  %v5348_v40 = vld [vmem:[%s6991_s1 + $0x42c] ss:$16 sps:$4 sm:$0xff]  }
  0xcc   : > { %2467 = vmatmul.mubr.bf16.gmra.mrb[40].mxu1 %v5237_v34  ;;  %2087 = vmatprep.subr.bf16.mxu0 %v5255_v42  ;;  %v5336_v34 = vld [vmem:[%s6991_s1 + $0x424] ss:$16 sps:$4 sm:$0xff]   ;;  %v5343_v42 = vld [vmem:[%s6991_s1 + $0x440] ss:$16 sps:$4 sm:$0xff]  }
  0xcd   : > { %2536 = vmatpush1.bf16.msra.mxu1 %v5247_v41  ;;  %2476 = vmatprep.mubr.bf16.mxu1 %v5250_v39  ;;  %v5345_v39 = vld [vmem:[%s6991_s1 + $0x444] ss:$16 sps:$4 sm:$0xff]   ;;  %v5342_v41 = vld [vmem:[%s5945_s14 + $0x40] ss:$28 sps:$4 sm:$0xff]  }
  0xce   : > { %2537 = vmatprep.subr.bf16.mxu1 %v5258_v43  ;;  %2025 = vmatmul.mubr.bf16.gmra.mrb[12].mxu0 %v5252_v44  ;;  %v5346_v43 = vld [vmem:[%s6991_s1 + $0x428] ss:$16 sps:$4 sm:$0xff]  }
  0xcf   : > { %2088 = vmatpush1.bf16.msra.mxu0 %v5253_v45  ;;  %2034 = vmatprep.mubr.bf16.mxu0 %v5265_v49  ;;  %v5354_v45 = vld [vmem:[%s6991_s1 + $0x44c] ss:$16 sps:$4 sm:$0xff]  }
  0xd0   : > { %2089 = vmatprep.subr.bf16.mxu0 %v5261_v47  ;;  %v5349_v47 = vld [vmem:[%s6991_s1 + $0x460] ss:$16 sps:$4 sm:$0xff]  }
  0xd1   : > { %2538 = vmatpush1.bf16.msra.mxu1 %v5256_v46  ;;  %v5355_v46 = vld [vmem:[%s5945_s14 + $0x7c] ss:$28 sps:$4 sm:$0xff]  }
  0xd2   : > { %2539 = vmatprep.subr.bf16.mxu1 %v5264_v48  ;;  %v5352_v48 = vld [vmem:[%s6991_s1 + $0x448] ss:$16 sps:$4 sm:$0xff]  }
  0xd3   : > { %2090 = vmatpush1.bf16.msra.mxu0 %v5259_v50  ;;  %v5363_v50 = vld [vmem:[%s6991_s1 + $0x46c] ss:$16 sps:$4 sm:$0xff]  }
  0xd4   : > { %2477 = vmatmul.mubr.bf16.gmra.mrb[44].mxu1 %v5252_v44  ;;  %2091 = vmatprep.subr.bf16.mxu0 %v5270_v52  ;;  %v5351_v44 = vld [vmem:[%s6991_s1 + $0x464] ss:$16 sps:$4 sm:$0xff]   ;;  %v5358_v52 = vld [vmem:[%s6991_s1 + $0x480] ss:$16 sps:$4 sm:$0xff]  }
  0xd5   : > { %2540 = vmatpush1.bf16.msra.mxu1 %v5262_v51  ;;  %2486 = vmatprep.mubr.bf16.mxu1 %v5265_v49  ;;  %v5360_v49 = vld [vmem:[%s6991_s1 + $0x484] ss:$16 sps:$4 sm:$0xff]  }
  0xd6   : > { %2541 = vmatprep.subr.bf16.mxu1 %v5273_v53  ;;  %2035 = vmatmul.mubr.bf16.gmra.mrb[16].mxu0 %v5267_v54  ;;  %v5357_v51 = vld [vmem:[%s5945_s14 + $0x78] ss:$28 sps:$4 sm:$0xff]  }
  0xd7   : > { %2092 = vmatpush1.bf16.msra.mxu0 %v5268_v55  ;;  %2044 = vmatprep.mubr.bf16.mxu0 %v5280_v59  ;;  %v5361_v53 = vld [vmem:[%s6991_s1 + $0x468] ss:$16 sps:$4 sm:$0xff]   ;;  %v5369_v55 = vld [vmem:[%s6991_s1 + $0x48c] ss:$16 sps:$4 sm:$0xff]  }
  0xd8   : > { %2093 = vmatprep.subr.bf16.mxu0 %v5276_v57  ;;  %v5364_v57 = vld [vmem:[%s6991_s1 + $0x4a0] ss:$16 sps:$4 sm:$0xff]  }
  0xd9   : > { %2542 = vmatpush1.bf16.msra.mxu1 %v5271_v56  ;;  %v5370_v56 = vld [vmem:[%s5945_s14 + $0xb4] ss:$28 sps:$4 sm:$0xff]  }
  0xda   : > { %2543 = vmatprep.subr.bf16.mxu1 %v5279_v58  ;;  %v5367_v58 = vld [vmem:[%s6991_s1 + $0x488] ss:$16 sps:$4 sm:$0xff]  }
  0xdb   : > { %2094 = vmatpush1.bf16.msra.mxu0 %v5274_v60  ;;  %v5378_v60 = vld [vmem:[%s6991_s1 + $0x4ac] ss:$16 sps:$4 sm:$0xff]  }
  0xdc   : > { %2487 = vmatmul.mubr.bf16.gmra.mrb[48].mxu1 %v5267_v54  ;;  %2095 = vmatprep.subr.bf16.mxu0 %v5285_v62  ;;  %v5366_v54 = vld [vmem:[%s6991_s1 + $0x4a4] ss:$16 sps:$4 sm:$0xff]   ;;  %v5373_v62 = vld [vmem:[%s6991_s1 + $0x4c0] ss:$16 sps:$4 sm:$0xff]  }
  0xdd   : > { %2544 = vmatpush1.bf16.msra.mxu1 %v5277_v61  ;;  %2496 = vmatprep.mubr.bf16.mxu1 %v5280_v59  ;;  %v5375_v59 = vld [vmem:[%s6991_s1 + $0x4c4] ss:$16 sps:$4 sm:$0xff]   ;;  %v5372_v61 = vld [vmem:[%s5945_s14 + $0xb0] ss:$28 sps:$4 sm:$0xff]  }
  0xde   : > { %2545 = vmatprep.subr.bf16.mxu1 %v5288_v63  ;;  %2045 = vmatmul.mubr.bf16.gmra.mrb[20].mxu0 %v5282_v0  ;;  %v5376_v63 = vld [vmem:[%s6991_s1 + $0x4a8] ss:$16 sps:$4 sm:$0xff]  }
  0xdf   : > { %2096 = vmatpush1.bf16.msra.mxu0 %v5283_v2  ;;  %2054 = vmatprep.mubr.bf16.mxu0 %v5295_v6  ;;  %v5384_v2 = vld [vmem:[%s6991_s1 + $0x4cc] ss:$16 sps:$4 sm:$0xff]  }
  0xe0   : > { %2097 = vmatprep.subr.bf16.mxu0 %v5291_v4  ;;  %v5379_v4 = vld [vmem:[%s6991_s1 + $0x4e0] ss:$16 sps:$4 sm:$0xff]  }
  0xe1   : > { %2546 = vmatpush1.bf16.msra.mxu1 %v5286_v3  ;;  %v5385_v3 = vld [vmem:[%s5945_s14 + $0xec] ss:$28 sps:$4 sm:$0xff]  }
  0xe2   : > { %2547 = vmatprep.subr.bf16.mxu1 %v5294_v5  ;;  %v5382_v5 = vld [vmem:[%s6991_s1 + $0x4c8] ss:$16 sps:$4 sm:$0xff]  }
  0xe3   : > { %2098 = vmatpush1.bf16.msra.mxu0 %v5289_v7  ;;  %v5393_v7 = vld [vmem:[%s6991_s1 + $0x4ec] ss:$16 sps:$4 sm:$0xff]  }
  0xe4   : > { %2497 = vmatmul.mubr.bf16.gmra.mrb[52].mxu1 %v5282_v0  ;;  %2099 = vmatprep.subr.bf16.mxu0 %v5300_v9  ;;  %v5381_v0 = vld [vmem:[%s6991_s1 + $0x4e4] ss:$16 sps:$4 sm:$0xff]   ;;  %v5388_v9 = vld [vmem:[%s6991_s1 + $0x500] ss:$16 sps:$4 sm:$0xff]  }
  0xe5   : > { %2548 = vmatpush1.bf16.msra.mxu1 %v5292_v8  ;;  %2506 = vmatprep.mubr.bf16.mxu1 %v5295_v6  ;;  %v5390_v6 = vld [vmem:[%s6991_s1 + $0x504] ss:$16 sps:$4 sm:$0xff]  }
  0xe6   : > { %2549 = vmatprep.subr.bf16.mxu1 %v5303_v10  ;;  %2055 = vmatmul.mubr.bf16.gmra.mrb[24].mxu0 %v5297_v11  ;;  %v5387_v8 = vld [vmem:[%s5945_s14 + $0xe8] ss:$28 sps:$4 sm:$0xff]  }
  0xe7   : > { %2100 = vmatpush1.bf16.msra.mxu0 %v5298_v12  ;;  %2064 = vmatprep.mubr.bf16.mxu0 %v5310_v16  ;;  %v5391_v10 = vld [vmem:[%s6991_s1 + $0x4e8] ss:$16 sps:$4 sm:$0xff]   ;;  %v5399_v12 = vld [vmem:[%s6991_s1 + $0x50c] ss:$16 sps:$4 sm:$0xff]  }
  0xe8   : > { %2101 = vmatprep.subr.bf16.mxu0 %v5306_v14  ;;  %v5394_v14 = vld [vmem:[%s6991_s1 + $0x520] ss:$16 sps:$4 sm:$0xff]  }
  0xe9   : > { %2550 = vmatpush1.bf16.msra.mxu1 %v5301_v13  ;;  %v5400_v13 = vld [vmem:[%s5945_s14 + $0x124] ss:$28 sps:$4 sm:$0xff]  }
  0xea   : > { %2551 = vmatprep.subr.bf16.mxu1 %v5309_v15  ;;  %v5397_v15 = vld [vmem:[%s6991_s1 + $0x508] ss:$16 sps:$4 sm:$0xff]  }
  0xeb   : > { %2102 = vmatpush1.bf16.msra.mxu0 %v5304_v17  ;;  %v5408_v17 = vld [vmem:[%s6991_s1 + $0x52c] ss:$16 sps:$4 sm:$0xff]  }
  0xec   : > { %2507 = vmatmul.mubr.bf16.gmra.mrb[56].mxu1 %v5297_v11  ;;  %2103 = vmatprep.subr.bf16.mxu0 %v5315_v19  ;;  %v5396_v11 = vld [vmem:[%s6991_s1 + $0x524] ss:$16 sps:$4 sm:$0xff]   ;;  %v5403_v19 = vld [vmem:[%s6991_s1 + $0x540] ss:$16 sps:$4 sm:$0xff]  }
  0xed   : > { %2552 = vmatpush1.bf16.msra.mxu1 %v5307_v18  ;;  %2516 = vmatprep.mubr.bf16.mxu1 %v5310_v16  ;;  %v5405_v16 = vld [vmem:[%s6991_s1 + $0x544] ss:$16 sps:$4 sm:$0xff]   ;;  %v5402_v18 = vld [vmem:[%s5945_s14 + $0x120] ss:$28 sps:$4 sm:$0xff]  }
  0xee   : > { %2553 = vmatprep.subr.bf16.mxu1 %v5318_v20  ;;  %2065 = vmatmul.mubr.bf16.gmra.mrb[28].mxu0 %v5312_v21  ;;  %v5406_v20 = vld [vmem:[%s6991_s1 + $0x528] ss:$16 sps:$4 sm:$0xff]  }
  0xef   : > { %2104 = vmatpush1.bf16.msra.mxu0 %v5313_v22  ;;  %2107 = vmatprep.mubr.bf16.mxu0 %v5327_v26  ;;  %v5414_v22 = vld [vmem:[%s6991_s1 + $0x54c] ss:$16 sps:$4 sm:$0xff]  }
  0xf0   : > { %2105 = vmatprep.subr.bf16.mxu0 %v5321_v24  ;;  %v5412_v24 = vld [vmem:[%s6991_s1 + $0x548] ss:$16 sps:$4 sm:$0xff]  }
  0xf1   : > { %2554 = vmatpush1.bf16.msra.mxu1 %v5316_v23  ;;  %v5409_v23 = vld [vmem:[%s6991_s1 + $0x560] ss:$16 sps:$4 sm:$0xff]  }
  0xf2   : > { %2555 = vmatprep.subr.bf16.mxu1 %v5324_v25  ;;  %v5415_v25 = vld [vmem:[%s5945_s14 + $0x15c] ss:$28 sps:$4 sm:$0xff]  }
  0xf3   : > { %2106 = vmatpush1.bf16.msra.mxu0 %v5319_v27  ;;  %v5423_v27 = vld [vmem:[%s6991_s1 + $0x56c] ss:$16 sps:$4 sm:$0xff]  }
  0xf4   : > { %2517 = vmatmul.mubr.bf16.gmra.mrb[60].mxu1 %v5312_v21  ;;  %2188 = vmatprep.subr.bf16.mxu0 %v5330_v29  ;;  %v5411_v21 = vld [vmem:[%s6991_s1 + $0x564] ss:$16 sps:$4 sm:$0xff]   ;;  %v5418_v29 = vld [vmem:[%s6991_s1 + $0x580] ss:$16 sps:$4 sm:$0xff]  }
  0xf5   : > { %2556 = vmatpush1.bf16.msra.mxu1 %v5322_v28  ;;  %2559 = vmatprep.mubr.bf16.mxu1 %v5327_v26  ;;  %v5420_v26 = vld [vmem:[%s6991_s1 + $0x584] ss:$16 sps:$4 sm:$0xff]  }
  0xf6   : > { %2557 = vmatprep.subr.bf16.mxu1 %v5333_v30  ;;  %2108 = vmatmul.mubr.bf16.vlgmr.msra.gmra.mrb[0].mxu0 %v5325_v31  ;;  %v5417_v28 = vld [vmem:[%s5945_s14 + $0x158] ss:$28 sps:$4 sm:$0xff]  }
  0xf7   : > { %2189 = vmatpush1.bf16.msra.mxu0 %v5328_v32  ;;  %2117 = vmatprep.mubr.bf16.mxu0 %v5340_v36  ;;  %v5421_v30 = vld [vmem:[%s6991_s1 + $0x568] ss:$16 sps:$4 sm:$0xff]   ;;  %v5429_v32 = vld [vmem:[%s6991_s1 + $0x58c] ss:$16 sps:$4 sm:$0xff]  }
  0xf8   : > { %2190 = vmatprep.subr.bf16.mxu0 %v5336_v34  ;;  %v5424_v34 = vld [vmem:[%s6991_s1 + $0x5a0] ss:$16 sps:$4 sm:$0xff]  }
  0xf9   : > { %2558 = vmatpush1.bf16.msra.mxu1 %v5331_v33  ;;  %v5430_v33 = vld [vmem:[%s5945_s14 + $0x194] ss:$28 sps:$4 sm:$0xff]  }
  0xfa   : > { %2640 = vmatprep.subr.bf16.mxu1 %v5339_v35  ;;  %v5427_v35 = vld [vmem:[%s6991_s1 + $0x588] ss:$16 sps:$4 sm:$0xff]  }
  0xfb   : > { %2191 = vmatpush1.bf16.msra.mxu0 %v5334_v37  ;;  %v5438_v37 = vld [vmem:[%s6991_s1 + $0x5ac] ss:$16 sps:$4 sm:$0xff]  }
  0xfc   : > { %2560 = vmatmul.mubr.bf16.vlgmr.msra.gmra.mrb[32].mxu1 %v5325_v31  ;;  %2192 = vmatprep.subr.bf16.mxu0 %v5345_v39  ;;  %v5426_v31 = vld [vmem:[%s6991_s1 + $0x5a4] ss:$16 sps:$4 sm:$0xff]   ;;  %v5433_v39 = vld [vmem:[%s6991_s1 + $0x5c0] ss:$16 sps:$4 sm:$0xff]  }
  0xfd   : > { %2641 = vmatpush1.bf16.msra.mxu1 %v5337_v38  ;;  %2569 = vmatprep.mubr.bf16.mxu1 %v5340_v36  ;;  %v5435_v36 = vld [vmem:[%s6991_s1 + $0x5c4] ss:$16 sps:$4 sm:$0xff]   ;;  %v5432_v38 = vld [vmem:[%s5945_s14 + $0x190] ss:$28 sps:$4 sm:$0xff]  }
  0xfe   : > { %2642 = vmatprep.subr.bf16.mxu1 %v5348_v40  ;;  %2118 = vmatmul.mubr.bf16.gmra.mrb[4].mxu0 %v5342_v41  ;;  %v5436_v40 = vld [vmem:[%s6991_s1 + $0x5a8] ss:$16 sps:$4 sm:$0xff]  }
  0xff   : > { %2193 = vmatpush1.bf16.msra.mxu0 %v5343_v42  ;;  %2127 = vmatprep.mubr.bf16.mxu0 %v5355_v46  ;;  %v5444_v42 = vld [vmem:[%s6991_s1 + $0x5cc] ss:$16 sps:$4 sm:$0xff]  }
 0x100   : > { %2194 = vmatprep.subr.bf16.mxu0 %v5351_v44  ;;  %v5439_v44 = vld [vmem:[%s6991_s1 + $0x5e0] ss:$16 sps:$4 sm:$0xff]  }
 0x101   : > { %2643 = vmatpush1.bf16.msra.mxu1 %v5346_v43  ;;  %v5447_v43 = vld [vmem:[%s5945_s14 + $0x14] ss:$28 sps:$4 sm:$0xff]  }
 0x102   : > { %2644 = vmatprep.subr.bf16.mxu1 %v5354_v45  ;;  %v5442_v45 = vld [vmem:[%s6991_s1 + $0x5c8] ss:$16 sps:$4 sm:$0xff]  }
 0x103   : > { %2195 = vmatpush1.bf16.msra.mxu0 %v5349_v47  ;;  %v5445_v47 = vld [vmem:[%s5945_s14 + $0x10] ss:$28 sps:$4 sm:$0xff]  }
 0x104   : > { %2570 = vmatmul.mubr.bf16.gmra.mrb[36].mxu1 %v5342_v41  ;;  %2196 = vmatprep.subr.bf16.mxu0 %v5360_v49  ;;  %v5441_v41 = vld [vmem:[%s6991_s1 + $0x5e4] ss:$16 sps:$4 sm:$0xff]   ;;  %v5448_v49 = vld [vmem:[%s6991_s1 + $0x5e8] ss:$16 sps:$4 sm:$0xff]  }
 0x105   : > { %2645 = vmatpush1.bf16.msra.mxu1 %v5352_v48  ;;  %2579 = vmatprep.mubr.bf16.mxu1 %v5355_v46  ;;  %v5450_v46 = vld [vmem:[%s6991_s1 + $0x5ec] ss:$16 sps:$4 sm:$0xff]  }
 0x106   : > { %2646 = vmatprep.subr.bf16.mxu1 %v5363_v50  ;;  %2128 = vmatmul.mubr.bf16.gmra.mrb[8].mxu0 %v5357_v51  ;;  %v5477_v48 = vld [vmem:[#allocation5 + $0x4] ss:$8 sps:$4 sm:$0xff]  }
 0x107   : > { %2197 = vmatpush1.bf16.msra.mxu0 %v5358_v52  ;;  %2137 = vmatprep.mubr.bf16.mxu0 %v5370_v56  ;;  %v5454_v50 = vld [vmem:[%s5945_s14 + $0x4c] ss:$28 sps:$4 sm:$0xff]  }
 0x108   : > { %2198 = vmatprep.subr.bf16.mxu0 %v5366_v54  ;;  %v5475_v52 = vld [vmem:[#allocation5] ss:$8 sps:$4 sm:$0xff]  }
 0x109   : > { %2647 = vmatpush1.bf16.msra.mxu1 %v5361_v53  ;;  %v5480_v53 = vld [vmem:[#allocation5 + $0x14] ss:$8 sps:$4 sm:$0xff]  }
 0x10a   : > { %2648 = vmatprep.subr.bf16.mxu1 %v5369_v55  ;;  %v5451_v54 = vld [vmem:[%s6991_s1 + $0x608] ss:$16 sps:$4 sm:$0xff]  }
 0x10b   : > { %2199 = vmatpush1.bf16.msra.mxu0 %v5364_v57  ;;  %v5478_v55 = vld [vmem:[#allocation5 + $0x10] ss:$8 sps:$4 sm:$0xff]   ;;  %v5456_v57 = vld [vmem:[%s5945_s14 + $0x48] ss:$28 sps:$4 sm:$0xff]  }
 0x10c   : > { %2580 = vmatmul.mubr.bf16.gmra.mrb[40].mxu1 %v5357_v51  ;;  %2200 = vmatprep.subr.bf16.mxu0 %v5375_v59  ;;  %v5453_v51 = vld [vmem:[%s6991_s1 + $0x60c] ss:$16 sps:$4 sm:$0xff]  }
 0x10d   : > { %2649 = vmatpush1.bf16.msra.mxu1 %v5367_v58  ;;  %2589 = vmatprep.mubr.bf16.mxu1 %v5370_v56  ;;  %v5483_v56 = vld [vmem:[#allocation5 + $0x24] ss:$8 sps:$4 sm:$0xff]   ;;  %v5457_v58 = vld [vmem:[%s5945_s14 + $0x84] ss:$28 sps:$4 sm:$0xff]  }
 0x10e   : > { %2650 = vmatprep.subr.bf16.mxu1 %v5378_v60  ;;  %2138 = vmatmul.mubr.bf16.gmra.mrb[12].mxu0 %v5372_v61  ;;  %v5481_v59 = vld [vmem:[#allocation5 + $0x20] ss:$8 sps:$4 sm:$0xff]   ;;  %v5486_v60 = vld [vmem:[#allocation5 + $0x34] ss:$8 sps:$4 sm:$0xff]  }
 0x10f   : > { %2201 = vmatpush1.bf16.msra.mxu0 %v5373_v62  ;;  %2147 = vmatprep.mubr.bf16.mxu0 %v5385_v3  ;;  %v5489_v62 = vld [vmem:[#allocation5 + $0x44] ss:$8 sps:$4 sm:$0xff]  }
 0x110   : > { %2202 = vmatprep.subr.bf16.mxu0 %v5381_v0  ;;  %v5460_v0 = vld [vmem:[%s5945_s14 + $0xbc] ss:$28 sps:$4 sm:$0xff]  }
 0x111   : > { %2651 = vmatpush1.bf16.msra.mxu1 %v5376_v63  ;;  %v5459_v63 = vld [vmem:[%s5945_s14 + $0x80] ss:$28 sps:$4 sm:$0xff]  }
 0x112   : > { %2652 = vmatprep.subr.bf16.mxu1 %v5384_v2  ;;  %v5487_v2 = vld [vmem:[#allocation5 + $0x40] ss:$8 sps:$4 sm:$0xff]  }
 0x113   : > { %2203 = vmatpush1.bf16.msra.mxu0 %v5379_v4  ;;  %v5490_v4 = vld [vmem:[#allocation5 + $0x50] ss:$8 sps:$4 sm:$0xff]  }
 0x114   : > { %2590 = vmatmul.mubr.bf16.gmra.mrb[44].mxu1 %v5372_v61  ;;  %2204 = vmatprep.subr.bf16.mxu0 %v5390_v6  ;;  %v5484_v61 = vld [vmem:[#allocation5 + $0x30] ss:$8 sps:$4 sm:$0xff]  }
 0x115   : > { %2653 = vmatpush1.bf16.msra.mxu1 %v5382_v5  ;;  %2599 = vmatprep.mubr.bf16.mxu1 %v5385_v3  ;;  %v5492_v3 = vld [vmem:[#allocation5 + $0x54] ss:$8 sps:$4 sm:$0xff]   ;;  %v5495_v5 = vld [vmem:[#allocation5 + $0x64] ss:$8 sps:$4 sm:$0xff]  }
 0x116   : > { %2654 = vmatprep.subr.bf16.mxu1 %v5393_v7  ;;  %2148 = vmatmul.mubr.bf16.gmra.mrb[16].mxu0 %v5387_v8  ;;  %v5462_v6 = vld [vmem:[%s5945_s14 + $0xb8] ss:$28 sps:$4 sm:$0xff]  }
 0x117   : > { %2205 = vmatpush1.bf16.msra.mxu0 %v5388_v9  ;;  %2157 = vmatprep.mubr.bf16.mxu0 %v5400_v13  ;;  %v5463_v7 = vld [vmem:[%s5945_s14 + $0xf4] ss:$28 sps:$4 sm:$0xff]  }
 0x118   : > { %2206 = vmatprep.subr.bf16.mxu0 %v5396_v11 }
 0x119   : > { %2655 = vmatpush1.bf16.msra.mxu1 %v5391_v10  ;;  %v5498_v10 = vld [vmem:[#allocation5 + $0x74] ss:$8 sps:$4 sm:$0xff]  }
 0x11a   : > { %2656 = vmatprep.subr.bf16.mxu1 %v5399_v12 }
 0x11b   : > { %2207 = vmatpush1.bf16.msra.mxu0 %v5394_v14  ;;  %v5496_v14 = vld [vmem:[#allocation5 + $0x70] ss:$8 sps:$4 sm:$0xff]  }
 0x11c   : > { %2600 = vmatmul.mubr.bf16.gmra.mrb[48].mxu1 %v5387_v8  ;;  %2208 = vmatprep.subr.bf16.mxu0 %v5405_v16  ;;  %v5493_v8 = vld [vmem:[#allocation5 + $0x60] ss:$8 sps:$4 sm:$0xff]  }
 0x11d   : > { %2657 = vmatpush1.bf16.msra.mxu1 %v5397_v15  ;;  %2609 = vmatprep.mubr.bf16.mxu1 %v5400_v13  ;;  %v5501_v15 = vld [vmem:[#allocation5 + $0x84] ss:$8 sps:$4 sm:$0xff]  }
 0x11e   : > { %2658 = vmatprep.subr.bf16.mxu1 %v5408_v17  ;;  %2158 = vmatmul.mubr.bf16.gmra.mrb[20].mxu0 %v5402_v18  ;;  %v5465_v16 = vld [vmem:[%s5945_s14 + $0xf0] ss:$28 sps:$4 sm:$0xff]  }
 0x11f   : > { %2209 = vmatpush1.bf16.msra.mxu0 %v5403_v19  ;;  %2167 = vmatprep.mubr.bf16.mxu0 %v5415_v25  ;;  %v5466_v17 = vld [vmem:[%s5945_s14 + $0x12c] ss:$28 sps:$4 sm:$0xff]  }
 0x120   : > { %2210 = vmatprep.subr.bf16.mxu0 %v5411_v21 }
 0x121   : > { %2659 = vmatpush1.bf16.msra.mxu1 %v5406_v20  ;;  %v5504_v20 = vld [vmem:[#allocation5 + $0x94] ss:$8 sps:$4 sm:$0xff]  }
 0x122   : > { %2660 = vmatprep.subr.bf16.mxu1 %v5414_v22 }
 0x123   : > { %2211 = vmatpush1.bf16.msra.mxu0 %v5409_v23 }
 0x124   : > { %2610 = vmatmul.mubr.bf16.gmra.mrb[52].mxu1 %v5402_v18  ;;  %2212 = vmatprep.subr.bf16.mxu0 %v5420_v26  ;;  %v5499_v18 = vld [vmem:[#allocation5 + $0x80] ss:$8 sps:$4 sm:$0xff]  }
 0x125   : > { %2661 = vmatpush1.bf16.msra.mxu1 %v5412_v24  ;;  %2619 = vmatprep.mubr.bf16.mxu1 %v5415_v25  ;;  %v5502_v24 = vld [vmem:[#allocation5 + $0x90] ss:$8 sps:$4 sm:$0xff]   ;;  %v5507_v25 = vld [vmem:[#allocation5 + $0xa4] ss:$8 sps:$4 sm:$0xff]  }
 0x126   : > { %2662 = vmatprep.subr.bf16.mxu1 %v5423_v27  ;;  %2168 = vmatmul.mubr.bf16.gmra.mrb[24].mxu0 %v5417_v28  ;;  %v5468_v26 = vld [vmem:[%s5945_s14 + $0x128] ss:$28 sps:$4 sm:$0xff]  }
 0x127   : > { %2213 = vmatpush1.bf16.msra.mxu0 %v5418_v29  ;;  %2177 = vmatprep.mubr.bf16.mxu0 %v5430_v33  ;;  %v5469_v27 = vld [vmem:[%s5945_s14 + $0x164] ss:$28 sps:$4 sm:$0xff]  }
 0x128   : > { %2214 = vmatprep.subr.bf16.mxu0 %v5426_v31 }
 0x129   : > { %2663 = vmatpush1.bf16.msra.mxu1 %v5421_v30  ;;  %v5510_v30 = vld [vmem:[#allocation5 + $0xb4] ss:$8 sps:$4 sm:$0xff]  }
 0x12a   : > { %2664 = vmatprep.subr.bf16.mxu1 %v5429_v32 }
 0x12b   : > { %2215 = vmatpush1.bf16.msra.mxu0 %v5424_v34  ;;  %v5508_v34 = vld [vmem:[#allocation5 + $0xb0] ss:$8 sps:$4 sm:$0xff]  }
 0x12c   : > { %2620 = vmatmul.mubr.bf16.gmra.mrb[56].mxu1 %v5417_v28  ;;  %2216 = vmatprep.subr.bf16.mxu0 %v5435_v36  ;;  %v5505_v28 = vld [vmem:[#allocation5 + $0xa0] ss:$8 sps:$4 sm:$0xff]   ;;  %v5471_v36 = vld [vmem:[%s5945_s14 + $0x160] ss:$28 sps:$4 sm:$0xff]  }
 0x12d   : > { %2665 = vmatpush1.bf16.msra.mxu1 %v5427_v35  ;;  %2629 = vmatprep.mubr.bf16.mxu1 %v5430_v33  ;;  %v5513_v35 = vld [vmem:[#allocation5 + $0xc4] ss:$8 sps:$4 sm:$0xff]  }
 0x12e   : > { %2666 = vmatprep.subr.bf16.mxu1 %v5438_v37  ;;  %2178 = vmatmul.mubr.bf16.gmra.mrb[28].mxu0 %v5432_v38  ;;  %v5472_v37 = vld [vmem:[%s5945_s14 + $0x19c] ss:$28 sps:$4 sm:$0xff]  }
 0x12f   : > { %2217 = vmatpush1.bf16.msra.mxu0 %v5433_v39  ;;  %2220 = vmatprep.mubr.bf16.mxu0 %v5447_v43 }
 0x130   : > { %2218 = vmatprep.subr.bf16.mxu0 %v5441_v41 }
 0x131   : > { %2667 = vmatpush1.bf16.msra.mxu1 %v5436_v40 }
 0x132   : > { %2668 = vmatprep.subr.bf16.mxu1 %v5444_v42 }
 0x133   : > { %2219 = vmatpush1.bf16.msra.mxu0 %v5439_v44 }
 0x134   : > { %2630 = vmatmul.mubr.bf16.gmra.mrb[60].mxu1 %v5432_v38  ;;  %3486 = vmatprep.subr.bf16.mxu0 %v5477_v48  ;;  %v5511_v38 = vld [vmem:[#allocation5 + $0xc0] ss:$8 sps:$4 sm:$0xff]  }
 0x135   : > { %2669 = vmatpush1.bf16.msra.mxu1 %v5442_v45  ;;  %2672 = vmatprep.mubr.bf16.mxu1 %v5447_v43  ;;  %v5474_v43 = vld [vmem:[%s5945_s14 + $0x198] ss:$28 sps:$4 sm:$0xff]  }
 0x136   : > { %2670 = vmatprep.subr.bf16.mxu1 %v5450_v46  ;;  %2221 = vmatmul.mubr.bf16.vlgmr.msra.gmra.mrb[0].mxu0 %v5445_v47 }
 0x137   : > { %2230 = vmatprep.mubr.bf16.mxu0 %v5454_v50  ;;  %3487 = vmatpush1.bf16.msra.mxu0 %v5475_v52  ;;  %v5587_v52 = vld [vmem:[%s5945_s14 + $0x18] ss:$28 sps:$4 sm:$0xff]  }
 0x138   : > { %3488 = vmatprep.subr.bf16.mxu0 %v5480_v53 }
 0x139   : > { %2671 = vmatpush1.bf16.msra.mxu1 %v5448_v49 }
 0x13a   : > { %2753 = vmatprep.subr.bf16.mxu1 %v5453_v51 }
 0x13b   : > { %3489 = vmatpush1.bf16.msra.mxu0 %v5478_v55 }
 0x13c   : > { %2673 = vmatmul.mubr.bf16.vlgmr.msra.gmra.mrb[32].mxu1 %v5445_v47  ;;  %3490 = vmatprep.subr.bf16.mxu0 %v5483_v56 }
 0x13d   : > { %2754 = vmatpush1.bf16.msra.mxu1 %v5451_v54  ;;  %2682 = vmatprep.mubr.bf16.mxu1 %v5454_v50 }
 0x13e   : > { %2231 = vmatmul.mubr.bf16.gmra.mrb[4].mxu0 %v5456_v57 }
 0x13f   : > { %2240 = vmatprep.mubr.bf16.mxu0 %v5457_v58  ;;  %3491 = vmatpush1.bf16.msra.mxu0 %v5481_v59 }
 0x140   : > { %3492 = vmatprep.subr.bf16.mxu0 %v5486_v60 }
 0x143   : > { %3493 = vmatpush1.bf16.msra.mxu0 %v5484_v61 }
 0x144   : > { %2683 = vmatmul.mubr.bf16.gmra.mrb[36].mxu1 %v5456_v57  ;;  %3494 = vmatprep.subr.bf16.mxu0 %v5489_v62  ;;  %v5588_v57 = vld [vmem:[%s5945_s14 + $0x50] ss:$28 sps:$4 sm:$0xff]   ;;  %v5516_v62 = vld [vmem:[#allocation5 + $0xd4] ss:$8 sps:$4 sm:$0xff]  }
 0x145   : > { %2692 = vmatprep.mubr.bf16.mxu1 %v5457_v58 }
 0x146   : > { %2241 = vmatmul.mubr.bf16.gmra.mrb[8].mxu0 %v5459_v63 }
 0x147   : > { %2250 = vmatprep.mubr.bf16.mxu0 %v5460_v0  ;;  %3495 = vmatpush1.bf16.msra.mxu0 %v5487_v2  ;;  %v5519_v2 = vld [vmem:[#allocation5 + $0xe4] ss:$8 sps:$4 sm:$0xff]  }
 0x148   : > { %3496 = vmatprep.subr.bf16.mxu0 %v5492_v3  ;;  %v5517_v3 = vld [vmem:[#allocation5 + $0xe0] ss:$8 sps:$4 sm:$0xff]  }
 0x14b   : > { %3497 = vmatpush1.bf16.msra.mxu0 %v5490_v4  ;;  %v5522_v4 = vld [vmem:[#allocation5 + $0xf4] ss:$8 sps:$4 sm:$0xff]  }
 0x14c   : > { %2693 = vmatmul.mubr.bf16.gmra.mrb[40].mxu1 %v5459_v63  ;;  %3498 = vmatprep.subr.bf16.mxu0 %v5495_v5  ;;  %v5589_v63 = vld [vmem:[%s5945_s14 + $0x88] ss:$28 sps:$4 sm:$0xff]   ;;  %v5590_v5 = vld [vmem:[%s5945_s14 + $0xc0] ss:$28 sps:$4 sm:$0xff]  }
 0x14d   : > { %2702 = vmatprep.mubr.bf16.mxu1 %v5460_v0  ;;  %v5514_v0 = vld [vmem:[#allocation5 + $0xd0] ss:$8 sps:$4 sm:$0xff]  }
 0x14e   : > { %2251 = vmatmul.mubr.bf16.gmra.mrb[12].mxu0 %v5462_v6 }
 0x14f   : > { %v6593_v9 = vpop.f32.mrb[0].mxu1  ;;  %2260 = vmatprep.mubr.bf16.mxu0 %v5463_v7  ;;  %3499 = vmatpush1.bf16.msra.mxu0 %v5493_v8  ;;  %v5591_v8 = vld [vmem:[%s5945_s14 + $0xf8] ss:$28 sps:$4 sm:$0xff]  }
 0x150   : > { %v6595_v11 = vpop.f32.mrb[1].mxu1  ;;  %3500 = vmatprep.subr.bf16.mxu0 %v5498_v10  ;;  %v5592_v10 = vld [vmem:[%s5945_s14 + $0x130] ss:$28 sps:$4 sm:$0xff]  }
 0x151   : > { %v6597_v12 = vpop.f32.mrb[2].mxu1 }
 0x152   : > { %v6599_v13 = vpop.f32.mrb[3].mxu1 }
 0x153   : > { %3501 = vmatpush1.bf16.msra.mxu0 %v5496_v14  ;;  %v5593_v14 = vld [vmem:[%s5945_s14 + $0x168] ss:$28 sps:$4 sm:$0xff]  }
 0x154   : > { %2703 = vmatmul.mubr.bf16.gmra.mrb[44].mxu1 %v5462_v6  ;;  %3502 = vmatprep.subr.bf16.mxu0 %v5501_v15  ;;  %v5520_v6 = vld [vmem:[#allocation5 + $0xf0] ss:$8 sps:$4 sm:$0xff]  }
 0x155   : > { %2712 = vmatprep.mubr.bf16.mxu1 %v5463_v7  ;;  %v5525_v7 = vld [vmem:[#allocation5 + $0x104] ss:$8 sps:$4 sm:$0xff]   ;;  %v5594_v15 = vld [vmem:[%s5945_s14 + $0x1a0] ss:$28 sps:$4 sm:$0xff]  }
 0x156   : > { %2261 = vmatmul.mubr.bf16.gmra.mrb[16].mxu0 %v5465_v16 }
 0x157   : > { %v6603_v19 = vpop.f32.mrb[4].mxu1  ;;  %2270 = vmatprep.mubr.bf16.mxu0 %v5466_v17  ;;  %3503 = vmatpush1.bf16.msra.mxu0 %v5499_v18 }
 0x158   : > { %v6605_v21 = vpop.f32.mrb[5].mxu1  ;;  %3504 = vmatprep.subr.bf16.mxu0 %v5504_v20  ;;  %v6693_v20 = vld [vmem:[#allocation3] sm:$0xf] }
 0x159   : > { %v6607_v22 = vpop.f32.mrb[6].mxu1 }
 0x15a   : > { %v6609_v23 = vpop.f32.mrb[7].mxu1 }
 0x15b   : > { %3505 = vmatpush1.bf16.msra.mxu0 %v5502_v24 }
 0x15c   : > { %2713 = vmatmul.mubr.bf16.gmra.mrb[48].mxu1 %v5465_v16  ;;  %3506 = vmatprep.subr.bf16.mxu0 %v5507_v25  ;;  %v657_v16 = vlaneseq }
 0x15d   : > { %2722 = vmatprep.mubr.bf16.mxu1 %v5466_v17 }
 0x15e   : > { %2271 = vmatmul.mubr.bf16.gmra.mrb[20].mxu0 %v5468_v26  ;;  %v6688_v17 = vshrl.u32 %v657_v16, 7 }
 0x15f   : > { %v6613_v29 = vpop.f32.mrb[8].mxu1  ;;  %2280 = vmatprep.mubr.bf16.mxu0 %v5469_v27  ;;  %3507 = vmatpush1.bf16.msra.mxu0 %v5505_v28 }
 0x160   : > { %v6615_v31 = vpop.f32.mrb[9].mxu1  ;;  %3508 = vmatprep.subr.bf16.mxu0 %v5510_v30  ;;  %v6691_v18 = vsub.s32 0, %v6688_v17  ;;  %v663_v24 = vsub.s32 1, %v6688_v17 }
 0x161   : > { %v6617_v32 = vpop.f32.mrb[10].mxu1 }
 0x162   : > { %v6619_v33 = vpop.f32.mrb[11].mxu1  ;;  %v6698_v25 = vrot.slane %v6693_v20, %v6691_v18 }
 0x163   : > { %3509 = vmatpush1.bf16.msra.mxu0 %v5508_v34 }
 0x164   : > { %2723 = vmatmul.mubr.bf16.gmra.mrb[52].mxu1 %v5468_v26  ;;  %3510 = vmatprep.subr.bf16.mxu0 %v5513_v35 }
 0x165   : > { %2732 = vmatprep.mubr.bf16.mxu1 %v5469_v27 }
 0x166   : > { %2281 = vmatmul.mubr.bf16.gmra.mrb[24].mxu0 %v5471_v36 }
 0x167   : > { %v6623_v39 = vpop.f32.mrb[12].mxu1  ;;  %2290 = vmatprep.mubr.bf16.mxu0 %v5472_v37  ;;  %3511 = vmatpush1.bf16.msra.mxu0 %v5511_v38 }
 0x168   : > { %v6625_v40 = vpop.f32.mrb[13].mxu1  ;;  %3512 = vmatprep.subr.bf16.mxu0 %v5516_v62 }
 0x169   : > { %v6627_v41 = vpop.f32.mrb[14].mxu1 }
 0x16a   : > { %v6629_v42 = vpop.f32.mrb[15].mxu1 }
 0x16b   : > { %3513 = vmatpush1.bf16.msra.mxu0 %v5514_v0 }
 0x16c   : > { %2733 = vmatmul.mubr.bf16.gmra.mrb[56].mxu1 %v5471_v36  ;;  %3514 = vmatprep.subr.bf16.mxu0 %v5519_v2 }
 0x16d   : > { %2742 = vmatprep.mubr.bf16.mxu1 %v5472_v37 }
 0x16e   : > { %2291 = vmatmul.mubr.bf16.gmra.mrb[28].mxu0 %v5474_v43 }
 0x16f   : > { %v6632_v44 = vpop.f32.mrb[16].mxu1  ;;  %3515 = vmatpush1.bf16.msra.mxu0 %v5517_v3  ;;  %v5571_v3 = vld [vmem:[%s6995_s5 + $0x40] sm:$0xff]  }
 0x170   : > { %v6634_v45 = vpop.f32.mrb[17].mxu1  ;;  %3516 = vmatprep.subr.bf16.mxu0 %v5522_v4  ;;  %4664 = vmatprep.subr.bf16.mxu1 %v5571_v3 }
 0x171   : > { %v6636_v46 = vpop.f32.mrb[18].mxu1 }
 0x172   : > { %v6638_v47 = vpop.f32.mrb[19].mxu1 }
 0x173   : > { %3517 = vmatpush1.bf16.msra.mxu0 %v5520_v6 }
 0x174   : > { %2743 = vmatmul.mubr.bf16.gmra.mrb[60].mxu1 %v5474_v43  ;;  %3599 = vmatprep.subr.bf16.mxu0 %v5525_v7 }
 0x175   : > { %2785 = vmatprep.mubr.bf16.mxu1 %v5733_v1 }
 0x177   : > { %v6641_v48 = vpop.f32.mrb[20].mxu1 }
 0x178   : > { %v6643_v49 = vpop.f32.mrb[21].mxu1 }
 0x179   : > { %v6645_v50 = vpop.f32.mrb[22].mxu1 }
 0x17a   : > { %v6647_v51 = vpop.f32.mrb[23].mxu1 }
 0x17c   : > { %4572 = vmatmul.mubr.msk.bf16.vlgmr.msra.gmra.mrb[32].mxu1 %vm1937_vm0, %v5587_v52 }
 0x17d   : > { %2795 = vmatprep.mubr.bf16.mxu1 %v5733_v1 }
 0x17f   : > { %v6652_v53 = vpop.f32.mrb[24].mxu1 }
 0x180   : > { %v6654_v54 = vpop.f32.mrb[25].mxu1 }
 0x181   : > { %v6656_v55 = vpop.f32.mrb[26].mxu1 }
 0x182   : > { %v6658_v56 = vpop.f32.mrb[27].mxu1 }
 0x184   : > { %4573 = vmatmul.mubr.msk.bf16.gmra.mrb[36].mxu1 %vm1937_vm0, %v5588_v57 }
 0x185   : > { %2805 = vmatprep.mubr.bf16.mxu1 %v5733_v1 }
 0x187   : > { %v6663_v58 = vpop.f32.mrb[28].mxu1 }
 0x188   : > { %v6665_v59 = vpop.f32.mrb[29].mxu1 }
 0x189   : > { %v6667_v60 = vpop.f32.mrb[30].mxu1 }
 0x18a   : > { %v6669_v61 = vpop.f32.mrb[31].mxu1 }
 0x18c   : > { %4574 = vmatmul.mubr.msk.bf16.gmra.mrb[40].mxu1 %vm1937_vm0, %v5589_v63 }
 0x18d   : > { %2815 = vmatprep.mubr.bf16.mxu1 %v5733_v1 }
 0x194   : > { %4575 = vmatmul.mubr.msk.bf16.gmra.mrb[44].mxu1 %vm1937_vm0, %v5590_v5 }
 0x195   : > { %2825 = vmatprep.mubr.bf16.mxu1 %v5733_v1 }
 0x19c   : > { %4576 = vmatmul.mubr.msk.bf16.gmra.mrb[48].mxu1 %vm1937_vm0, %v5591_v8 }
 0x19d   : > { %2835 = vmatprep.mubr.bf16.mxu1 %v5733_v1 }
 0x1a4   : > { %4577 = vmatmul.mubr.msk.bf16.gmra.mrb[52].mxu1 %vm1937_vm0, %v5592_v10 }
 0x1a5   : > { %2845 = vmatprep.mubr.bf16.mxu1 %v5733_v1 }
 0x1ac   : > { %4578 = vmatmul.mubr.msk.bf16.gmra.mrb[56].mxu1 %vm1937_vm0, %v5593_v14 }
 0x1ad   : > { %2855 = vmatprep.mubr.bf16.mxu1 %v5733_v1  ;;  %v6703_v1 = vrot.slane %v6693_v20, %v663_v24 }
 0x1b4   : > { %4579 = vmatmul.mubr.msk.bf16.gmra.mrb[60].mxu1 %vm1937_vm0, %v5594_v15 }
 0x209   : > { %v2222_v26 = vpop.f32.mrb[0].mxu0 }
 0x20a   : > { %v4728_v27 = vadd.f32 %v2222_v26, %v6698_v25  ;;  %v2224_v28 = vpop.f32.mrb[1].mxu0 }
 0x20b   : > { %v4730_v30 = vadd.f32 %v2224_v28, %v6703_v1  ;;  %v2226_v34 = vpop.f32.mrb[2].mxu0 }
 0x20c   : > { %v4729_v35 = vadd.f32 %v4728_v27, %v6593_v9  ;;  %v4732_v36 = vadd.f32 %v2226_v34, %v6698_v25  ;;  %v2228_v37 = vpop.f32.mrb[3].mxu0  ;;  %v5574_v34 = vld [vmem:[%s6995_s5 + $0x8] sm:$0xff]  }
 0x20d   : > { %v4731_v38 = vadd.f32 %v4730_v30, %v6595_v11  ;;  %v4734_v43 = vadd.f32 %v2228_v37, %v6703_v1  ;;  %v5572_v11 = vld [vmem:[%s6995_s5] sm:$0xff]  }
 0x20e   : > { %v2930_v52 = vmul.f32 0.2, %v4729_v35  ;;  %v4733_v57 = vadd.f32 %v4732_v36, %v6597_v12  ;;  %vm2866_vm1 = vcmp.gt.f32.partialorder %v4729_v35, 0.0  ;;  %v5523_v30 = vld [vmem:[#allocation5 + $0x100] ss:$8 sps:$4 sm:$0xff]   ;;  %4665 = vmatpush3.bf16.msra.mxu1 %v5572_v11 }
 0x20f   : > { %v2931_v62 = vmul.f32 0.2, %v4731_v38  ;;  %v4735_v63 = vadd.f32 %v4734_v43, %v6599_v13  ;;  %vm2867_vm2 = vcmp.gt.f32.partialorder %v4731_v38, 0.0  ;;  %v5573_v13 = vld [vmem:[%s6995_s5 + $0x48] sm:$0xff]   ;;  %v5528_v37 = vld [vmem:[#allocation5 + $0x114] ss:$8 sps:$4 sm:$0xff]  }
 0x210   : > { %vm2870_vm3 = vcmp.gt.f32.partialorder %v4733_v57, 0.0  ;;  %v2934_v0 = vmul.f32 0.2, %v4733_v57  ;;  %v2994_v4 = vsel %vm2866_vm1, %v4729_v35, %v2930_v52  ;;  %4666 = vmatprep.subr.bf16.mxu1 %v5573_v13  ;;  %v5526_v52 = vld [vmem:[#allocation5 + $0x110] ss:$8 sps:$4 sm:$0xff]  }
 0x211   : > { %vm2871_vm4 = vcmp.gt.f32.partialorder %v4735_v63, 0.0  ;;  %v2935_v2 = vmul.f32 0.2, %v4735_v63  ;;  %v2232_v9 = vpop.f32.mrb[4].mxu0  ;;  %v2995_v14 = vsel %vm2867_vm2, %v4731_v38, %v2931_v62 }
 0x212   : > { %v2998_v12 = vsel %vm2870_vm3, %v4733_v57, %v2934_v0  ;;  %v4736_v5 = vadd.f32 %v2232_v9, %v6698_v25  ;;  %v2234_v6 = vpop.f32.mrb[5].mxu0  ;;  %4667 = vmatpush3.bf16.msra.mxu1 %v5574_v34  ;;  %v5576_v0 = vld [vmem:[%s6995_s5 + $0x10] sm:$0xff]  }
 0x213   : > { %v3058_v7 = vpack.c.bf16 %v2998_v12, %v2994_v4  ;;  %v4738_v8 = vadd.f32 %v2234_v6, %v6703_v1  ;;  %v2236_v10 = vpop.f32.mrb[6].mxu0  ;;  %v2999_v15 = vsel %vm2871_vm4, %v4735_v63, %v2935_v2  ;;  %v5531_v63 = vld [vmem:[#allocation5 + $0x124] ss:$8 sps:$4 sm:$0xff]  }
 0x214   : > { %v4737_v16 = vadd.f32 %v4736_v5, %v6603_v19  ;;  %v4740_v26 = vadd.f32 %v2236_v10, %v6698_v25  ;;  %v2238_v27 = vpop.f32.mrb[7].mxu0  ;;  %v3059_v28 = vpack.c.bf16 %v2999_v15, %v2995_v14  ;;  %v5575_v19 = vld [vmem:[%s6995_s5 + $0x50] sm:$0xff]  }
 0x215   : > { %v4739_v35 = vadd.f32 %v4738_v8, %v6605_v21  ;;  %v4742_v36 = vadd.f32 %v2238_v27, %v6703_v1  ;;  %4668 = vmatprep.subr.bf16.mxu1 %v5575_v19 }
 0x216   : > { %v2938_v38 = vmul.f32 0.2, %v4737_v16  ;;  %v4741_v43 = vadd.f32 %v4740_v26, %v6607_v22  ;;  %3518 = vmatprep.mubr.bf16.mxu0 %v3059_v28  ;;  %vm2874_vm5 = vcmp.gt.f32.partialorder %v4737_v16, 0.0  ;;  %v5529_v26 = vld [vmem:[#allocation5 + $0x120] ss:$8 sps:$4 sm:$0xff]   ;;  %4669 = vmatpush3.bf16.msra.mxu1 %v5576_v0 }
 0x217   : > { %v2939_v57 = vmul.f32 0.2, %v4739_v35  ;;  %v4743_v62 = vadd.f32 %v4742_v36, %v6609_v23  ;;  %3519 = vmatmul.mubr.bf16.vlgmr.msra.gmra.mrb[32].mxu0 %v3058_v7  ;;  %vm2875_vm6 = vcmp.gt.f32.partialorder %v4739_v35, 0.0  ;;  %v5577_v23 = vld [vmem:[%s6995_s5 + $0x58] sm:$0xff]  }
 0x218   : > { %vm2878_vm7 = vcmp.gt.f32.partialorder %v4741_v43, 0.0  ;;  %v2942_v21 = vmul.f32 0.2, %v4741_v43  ;;  %3600 = vmatpush1.bf16.msra.mxu0 %v5523_v30  ;;  %v3002_v11 = vsel %vm2874_vm5, %v4737_v16, %v2938_v38  ;;  %v5578_v16 = vld [vmem:[%s6995_s5 + $0x18] sm:$0xff]   ;;  %4670 = vmatprep.subr.bf16.mxu1 %v5577_v23 }
 0x219   : > { %vm2879_vm8 = vcmp.gt.f32.partialorder %v4743_v62, 0.0  ;;  %v2943_v2 = vmul.f32 0.2, %v4743_v62  ;;  %v2242_v22 = vpop.f32.mrb[8].mxu0  ;;  %3601 = vmatprep.subr.bf16.mxu0 %v5528_v37  ;;  %v3003_v6 = vsel %vm2875_vm6, %v4739_v35, %v2939_v57  ;;  %v5534_v30 = vld [vmem:[#allocation5 + $0x134] ss:$8 sps:$4 sm:$0xff]  }
 0x21a   : > { %v4744_v9 = vadd.f32 %v2242_v22, %v6698_v25  ;;  %v2244_v3 = vpop.f32.mrb[9].mxu0  ;;  %v3006_v4 = vsel %vm2878_vm7, %v4741_v43, %v2942_v21  ;;  %v5532_v36 = vld [vmem:[#allocation5 + $0x130] ss:$8 sps:$4 sm:$0xff]   ;;  %4671 = vmatpush3.bf16.msra.mxu1 %v5578_v16 }
 0x21b   : > { %v4746_v12 = vadd.f32 %v2244_v3, %v6703_v1  ;;  %v2246_v5 = vpop.f32.mrb[10].mxu0  ;;  %v3007_v13 = vsel %vm2879_vm8, %v4743_v62, %v2943_v2  ;;  %v3062_v7 = vpack.c.bf16 %v3006_v4, %v3002_v11  ;;  %v5580_v43 = vld [vmem:[%s6995_s5 + $0x20] sm:$0xff]  }
 0x21c   : > { %v4745_v8 = vadd.f32 %v4744_v9, %v6613_v29  ;;  %v4748_v10 = vadd.f32 %v2246_v5, %v6698_v25  ;;  %v2248_v14 = vpop.f32.mrb[11].mxu0  ;;  %v3063_v15 = vpack.c.bf16 %v3007_v13, %v3003_v6  ;;  %3602 = vmatpush1.bf16.msra.mxu0 %v5526_v52  ;;  %v5579_v29 = vld [vmem:[%s6995_s5 + $0x60] sm:$0xff]   ;;  %v5582_v6 = vld [vmem:[%s6995_s5 + $0x28] sm:$0xff]  }
 0x21d   : > { %v4747_v27 = vadd.f32 %v4746_v12, %v6615_v31  ;;  %v4750_v28 = vadd.f32 %v2248_v14, %v6703_v1  ;;  %3603 = vmatprep.subr.bf16.mxu0 %v5531_v63  ;;  %v5537_v31 = vld [vmem:[#allocation5 + $0x144] ss:$8 sps:$4 sm:$0xff]   ;;  %4672 = vmatprep.subr.bf16.mxu1 %v5579_v29  ;;  %v5535_v5 = vld [vmem:[#allocation5 + $0x140] ss:$8 sps:$4 sm:$0xff]   ;;  %v5538_v16 = vld [vmem:[#allocation5 + $0x150] ss:$8 sps:$4 sm:$0xff]  }
 0x21e   : > { %v2946_v34 = vmul.f32 0.2, %v4745_v8  ;;  %v4749_v35 = vadd.f32 %v4748_v10, %v6617_v32  ;;  %3528 = vmatprep.mubr.bf16.mxu0 %v3063_v15  ;;  %vm2882_vm9 = vcmp.gt.f32.partialorder %v4745_v8, 0.0  ;;  %4673 = vmatpush3.bf16.msra.mxu1 %v5580_v43 }
 0x21f   : > { %v2947_v37 = vmul.f32 0.2, %v4747_v27  ;;  %v4751_v19 = vadd.f32 %v4750_v28, %v6619_v33  ;;  %3529 = vmatmul.mubr.bf16.gmra.mrb[36].mxu0 %v3062_v7  ;;  %vm2883_vm10 = vcmp.gt.f32.partialorder %v4747_v27, 0.0  ;;  %v5581_v33 = vld [vmem:[%s6995_s5 + $0x68] sm:$0xff]  }
 0x220   : > { %vm2886_vm11 = vcmp.gt.f32.partialorder %v4749_v35, 0.0  ;;  %v2950_v38 = vmul.f32 0.2, %v4749_v35  ;;  %3604 = vmatpush1.bf16.msra.mxu0 %v5529_v26  ;;  %v3010_v63 = vsel %vm2882_vm9, %v4745_v8, %v2946_v34  ;;  %v5540_v8 = vld [vmem:[#allocation5 + $0x154] ss:$8 sps:$4 sm:$0xff]   ;;  %4674 = vmatprep.subr.bf16.mxu1 %v5581_v33 }
 0x221   : > { %vm2887_vm12 = vcmp.gt.f32.partialorder %v4751_v19, 0.0  ;;  %v2951_v52 = vmul.f32 0.2, %v4751_v19  ;;  %v2252_v32 = vpop.f32.mrb[12].mxu0  ;;  %3605 = vmatprep.subr.bf16.mxu0 %v5534_v30  ;;  %v3011_v22 = vsel %vm2883_vm10, %v4747_v27, %v2947_v37  ;;  %v5584_v27 = vld [vmem:[%s6995_s5 + $0x30] sm:$0xff]  }
 0x222   : > { %v4752_v57 = vadd.f32 %v2252_v32, %v6698_v25  ;;  %v2254_v62 = vpop.f32.mrb[13].mxu0  ;;  %v3014_v21 = vsel %vm2886_vm11, %v4749_v35, %v2950_v38  ;;  %4675 = vmatpush3.bf16.msra.mxu1 %v5582_v6 }
 0x223   : > { %v4754_v0 = vadd.f32 %v2254_v62, %v6703_v1  ;;  %v2256_v2 = vpop.f32.mrb[14].mxu0  ;;  %v3015_v23 = vsel %vm2887_vm12, %v4751_v19, %v2951_v52  ;;  %v3066_v9 = vpack.c.bf16 %v3014_v21, %v3010_v63  ;;  %v5546_v21 = vld [vmem:[#allocation5 + $0x174] ss:$8 sps:$4 sm:$0xff]  }
 0x224   : > { %v4753_v3 = vadd.f32 %v4752_v57, %v6623_v39  ;;  %v4756_v11 = vadd.f32 %v2256_v2, %v6698_v25  ;;  %v2258_v4 = vpop.f32.mrb[15].mxu0  ;;  %v3067_v12 = vpack.c.bf16 %v3015_v23, %v3011_v22  ;;  %3606 = vmatpush1.bf16.msra.mxu0 %v5532_v36  ;;  %v5583_v39 = vld [vmem:[%s6995_s5 + $0x70] sm:$0xff]  }
 0x225   : > { %v4755_v13 = vadd.f32 %v4754_v0, %v6625_v40  ;;  %v4758_v7 = vadd.f32 %v2258_v4, %v6703_v1  ;;  %3607 = vmatprep.subr.bf16.mxu0 %v5537_v31  ;;  %4676 = vmatprep.subr.bf16.mxu1 %v5583_v39  ;;  %v5541_v57 = vld [vmem:[#allocation5 + $0x160] ss:$8 sps:$4 sm:$0xff]  }
 0x226   : > { %v2954_v10 = vmul.f32 0.2, %v4753_v3  ;;  %v4757_v14 = vadd.f32 %v4756_v11, %v6627_v41  ;;  %3538 = vmatprep.mubr.bf16.mxu0 %v3067_v12  ;;  %vm2890_vm13 = vcmp.gt.f32.partialorder %v4753_v3, 0.0  ;;  %v5543_v41 = vld [vmem:[#allocation5 + $0x164] ss:$8 sps:$4 sm:$0xff]   ;;  %4677 = vmatpush3.bf16.msra.mxu1 %v5584_v27 }
 0x227   : > { %v2955_v15 = vmul.f32 0.2, %v4755_v13  ;;  %v4759_v26 = vadd.f32 %v4758_v7, %v6629_v42  ;;  %3539 = vmatmul.mubr.bf16.gmra.mrb[40].mxu0 %v3066_v9  ;;  %vm2891_vm14 = vcmp.gt.f32.partialorder %v4755_v13, 0.0  ;;  %v5544_v9 = vld [vmem:[#allocation5 + $0x170] ss:$8 sps:$4 sm:$0xff]  }
 0x228   : > { %vm2894_vm15 = vcmp.gt.f32.partialorder %v4757_v14, 0.0  ;;  %v2958_v40 = vmul.f32 0.2, %v4757_v14  ;;  %3608 = vmatpush1.bf16.msra.mxu0 %v5535_v5  ;;  %v3018_v34 = vsel %vm2890_vm13, %v4753_v3, %v2954_v10  ;;  %v5549_v11 = vld [vmem:[#allocation5 + $0x184] ss:$8 sps:$4 sm:$0xff]  }
 0x229   : > { %vm2895_vm0 = vcmp.gt.f32.partialorder %v4759_v26, 0.0  ;;  %v2959_v28 = vmul.f32 0.2, %v4759_v26  ;;  %v2262_v30 = vpop.f32.mrb[16].mxu0  ;;  %3609 = vmatprep.subr.bf16.mxu0 %v5540_v8  ;;  %v3019_v19 = vsel %vm2891_vm14, %v4755_v13, %v2955_v15  ;;  %v5552_v27 = vld [vmem:[#allocation5 + $0x194] ss:$8 sps:$4 sm:$0xff]  }
 0x22a   : > { %v4760_v29 = vadd.f32 %v2262_v30, %v6698_v25  ;;  %v2264_v42 = vpop.f32.mrb[17].mxu0  ;;  %v3022_v35 = vsel %vm2894_vm15, %v4757_v14, %v2958_v40 }
 0x22b   : > { %v4762_v36 = vadd.f32 %v2264_v42, %v6703_v1  ;;  %v2266_v37 = vpop.f32.mrb[18].mxu0  ;;  %v3023_v31 = vsel %vm2895_vm0, %v4759_v26, %v2959_v28  ;;  %v3070_v38 = vpack.c.bf16 %v3022_v35, %v3018_v34  ;;  %v5547_v26 = vld [vmem:[#allocation5 + $0x180] ss:$8 sps:$4 sm:$0xff]   ;;  %v5550_v42 = vld [vmem:[#allocation5 + $0x190] ss:$8 sps:$4 sm:$0xff]  }
 0x22c   : > { %v4761_v43 = vadd.f32 %v4760_v29, %v6632_v44  ;;  %v4764_v52 = vadd.f32 %v2266_v37, %v6698_v25  ;;  %v2268_v32 = vpop.f32.mrb[19].mxu0  ;;  %v3071_v33 = vpack.c.bf16 %v3023_v31, %v3019_v19  ;;  %3610 = vmatpush1.bf16.msra.mxu0 %v5538_v16  ;;  %v5555_v35 = vld [vmem:[#allocation5 + $0x1a4] ss:$8 sps:$4 sm:$0xff]  }
 0x22d   : > { %v4763_v62 = vadd.f32 %v4762_v36, %v6634_v45  ;;  %v4766_v63 = vadd.f32 %v2268_v32, %v6703_v1  ;;  %3611 = vmatprep.subr.bf16.mxu0 %v5543_v41 }
 0x22e   : > { %v2962_v0 = vmul.f32 0.2, %v4761_v43  ;;  %v4765_v2 = vadd.f32 %v4764_v52, %v6636_v46  ;;  %3548 = vmatprep.mubr.bf16.mxu0 %v3071_v33  ;;  %vm2898_vm1 = vcmp.gt.f32.partialorder %v4761_v43, 0.0 }
 0x22f   : > { %v2963_v22 = vmul.f32 0.2, %v4763_v62  ;;  %v4767_v44 = vadd.f32 %v4766_v63, %v6638_v47  ;;  %3549 = vmatmul.mubr.bf16.gmra.mrb[44].mxu0 %v3070_v38  ;;  %vm2899_vm2 = vcmp.gt.f32.partialorder %v4763_v62, 0.0  ;;  %v5553_v63 = vld [vmem:[#allocation5 + $0x1a0] ss:$8 sps:$4 sm:$0xff]  }
 0x230   : > { %vm2902_vm3 = vcmp.gt.f32.partialorder %v4765_v2, 0.0  ;;  %v2966_v23 = vmul.f32 0.2, %v4765_v2  ;;  %3612 = vmatpush1.bf16.msra.mxu0 %v5541_v57  ;;  %v3026_v46 = vsel %vm2898_vm1, %v4761_v43, %v2962_v0 }
 0x231   : > { %vm2903_vm4 = vcmp.gt.f32.partialorder %v4767_v44, 0.0  ;;  %v2967_v45 = vmul.f32 0.2, %v4767_v44  ;;  %v2272_v3 = vpop.f32.mrb[20].mxu0  ;;  %3613 = vmatprep.subr.bf16.mxu0 %v5546_v21  ;;  %v3027_v13 = vsel %vm2899_vm2, %v4763_v62, %v2963_v22 }
 0x232   : > { %v4768_v4 = vadd.f32 %v2272_v3, %v6698_v25  ;;  %v2274_v12 = vpop.f32.mrb[21].mxu0  ;;  %v3030_v5 = vsel %vm2902_vm3, %v4765_v2, %v2966_v23  ;;  %v5558_v2 = vld [vmem:[#allocation5 + $0x1b4] ss:$8 sps:$4 sm:$0xff]  }
 0x233   : > { %v4770_v6 = vadd.f32 %v2274_v12, %v6703_v1  ;;  %v2276_v47 = vpop.f32.mrb[22].mxu0  ;;  %v3031_v7 = vsel %vm2903_vm4, %v4767_v44, %v2967_v45  ;;  %v3074_v8 = vpack.c.bf16 %v3030_v5, %v3026_v46  ;;  %v5556_v45 = vld [vmem:[#allocation5 + $0x1b0] ss:$8 sps:$4 sm:$0xff]  }
 0x234   : > { %v4769_v39 = vadd.f32 %v4768_v4, %v6641_v48  ;;  %v4772_v10 = vadd.f32 %v2276_v47, %v6698_v25  ;;  %v2278_v14 = vpop.f32.mrb[23].mxu0  ;;  %v3075_v15 = vpack.c.bf16 %v3031_v7, %v3027_v13  ;;  %3614 = vmatpush1.bf16.msra.mxu0 %v5544_v9 }
 0x235   : > { %v4771_v16 = vadd.f32 %v4770_v6, %v6643_v49  ;;  %v4774_v40 = vadd.f32 %v2278_v14, %v6703_v1  ;;  %3615 = vmatprep.subr.bf16.mxu0 %v5549_v11  ;;  %v5561_v11 = vld [vmem:[#allocation5 + $0x1c4] ss:$8 sps:$4 sm:$0xff]   ;;  %v5559_v14 = vld [vmem:[#allocation5 + $0x1c0] ss:$8 sps:$4 sm:$0xff]  }
 0x236   : > { %v2970_v28 = vmul.f32 0.2, %v4769_v39  ;;  %v4773_v30 = vadd.f32 %v4772_v10, %v6645_v50  ;;  %3558 = vmatprep.mubr.bf16.mxu0 %v3075_v15  ;;  %vm2906_vm5 = vcmp.gt.f32.partialorder %v4769_v39, 0.0 }
 0x237   : > { %v2971_v41 = vmul.f32 0.2, %v4771_v16  ;;  %v4775_v48 = vadd.f32 %v4774_v40, %v6647_v51  ;;  %3559 = vmatmul.mubr.bf16.gmra.mrb[48].mxu0 %v3074_v8  ;;  %vm2907_vm6 = vcmp.gt.f32.partialorder %v4771_v16, 0.0 }
 0x238   : > { %vm2910_vm7 = vcmp.gt.f32.partialorder %v4773_v30, 0.0  ;;  %v2974_v29 = vmul.f32 0.2, %v4773_v30  ;;  %3616 = vmatpush1.bf16.msra.mxu0 %v5547_v26  ;;  %v3034_v50 = vsel %vm2906_vm5, %v4769_v39, %v2970_v28  ;;  %v667_v28 = vsub.s32 2, %v6688_v17 }
 0x239   : > { %vm2911_vm8 = vcmp.gt.f32.partialorder %v4775_v48, 0.0  ;;  %v2975_v49 = vmul.f32 0.2, %v4775_v48  ;;  %v2282_v34 = vpop.f32.mrb[24].mxu0  ;;  %3617 = vmatprep.subr.bf16.mxu0 %v5552_v27  ;;  %v3035_v38 = vsel %vm2907_vm6, %v4771_v16, %v2971_v41  ;;  %v5564_v16 = vld [vmem:[#allocation5 + $0x1d4] ss:$8 sps:$4 sm:$0xff]  }
 0x23a   : > { %v4776_v36 = vadd.f32 %v2282_v34, %v6698_v25  ;;  %v2284_v37 = vpop.f32.mrb[25].mxu0  ;;  %v3038_v19 = vsel %vm2910_vm7, %v4773_v30, %v2974_v29  ;;  %v671_v30 = vsub.s32 3, %v6688_v17 }
 0x23b   : > { %v4778_v31 = vadd.f32 %v2284_v37, %v6703_v1  ;;  %v2286_v51 = vpop.f32.mrb[26].mxu0  ;;  %v3039_v43 = vsel %vm2911_vm8, %v4775_v48, %v2975_v49  ;;  %v3078_v52 = vpack.c.bf16 %v3038_v19, %v3034_v50  ;;  %v5567_v48 = vld [vmem:[#allocation5 + $0x1e4] ss:$8 sps:$4 sm:$0xff]   ;;  %v5565_v37 = vld [vmem:[#allocation5 + $0x1e0] ss:$8 sps:$4 sm:$0xff]  }
 0x23c   : > { %v4777_v32 = vadd.f32 %v4776_v36, %v6652_v53  ;;  %v4780_v33 = vadd.f32 %v2286_v51, %v6698_v25  ;;  %v2288_v57 = vpop.f32.mrb[27].mxu0  ;;  %v3079_v62 = vpack.c.bf16 %v3039_v43, %v3035_v38  ;;  %3618 = vmatpush1.bf16.msra.mxu0 %v5550_v42  ;;  %v6830_v49 = vrot.slane %v6693_v20, %v671_v30  ;;  %v5570_v19 = vld [vmem:[#allocation5 + $0x1f4] ss:$8 sps:$4 sm:$0xff]  }
 0x23d   : > { %v4779_v21 = vadd.f32 %v4778_v31, %v6654_v54  ;;  %v4782_v0 = vadd.f32 %v2288_v57, %v6703_v1  ;;  %3619 = vmatprep.subr.bf16.mxu0 %v5555_v35 }
 0x23e   : > { %v2978_v22 = vmul.f32 0.2, %v4777_v32  ;;  %v4781_v44 = vadd.f32 %v4780_v33, %v6656_v55  ;;  %3568 = vmatprep.mubr.bf16.mxu0 %v3079_v62  ;;  %vm2914_vm9 = vcmp.gt.f32.partialorder %v4777_v32, 0.0  ;;  %v5568_v33 = vld [vmem:[#allocation5 + $0x1f0] ss:$8 sps:$4 sm:$0xff]  }
 0x23f   : > { %v2979_v23 = vmul.f32 0.2, %v4779_v21  ;;  %v4783_v53 = vadd.f32 %v4782_v0, %v6658_v56  ;;  %3569 = vmatmul.mubr.bf16.gmra.mrb[52].mxu0 %v3078_v52  ;;  %vm2915_vm10 = vcmp.gt.f32.partialorder %v4779_v21, 0.0 }
 0x240   : > { %vm2918_vm11 = vcmp.gt.f32.partialorder %v4781_v44, 0.0  ;;  %v2982_v9 = vmul.f32 0.2, %v4781_v44  ;;  %3620 = vmatpush1.bf16.msra.mxu0 %v5553_v63  ;;  %v3042_v55 = vsel %vm2914_vm9, %v4777_v32, %v2978_v22 }
 0x241   : > { %vm2919_vm12 = vcmp.gt.f32.partialorder %v4783_v53, 0.0  ;;  %v2983_v54 = vmul.f32 0.2, %v4783_v53  ;;  %v2292_v3 = vpop.f32.mrb[28].mxu0  ;;  %3621 = vmatprep.subr.bf16.mxu0 %v5558_v2  ;;  %v3043_v6 = vsel %vm2915_vm10, %v4779_v21, %v2979_v23 }
 0x242   : > { %v4784_v4 = vadd.f32 %v2292_v3, %v6698_v25  ;;  %v2294_v12 = vpop.f32.mrb[29].mxu0  ;;  %v3046_v46 = vsel %vm2918_vm11, %v4781_v44, %v2982_v9 }
 0x243   : > { %v4786_v5 = vadd.f32 %v2294_v12, %v6703_v1  ;;  %v2296_v56 = vpop.f32.mrb[30].mxu0  ;;  %v3047_v47 = vsel %vm2919_vm12, %v4783_v53, %v2983_v54  ;;  %v3082_v13 = vpack.c.bf16 %v3046_v46, %v3042_v55 }
 0x244   : > { %v4785_v7 = vadd.f32 %v4784_v4, %v6663_v58  ;;  %v4788_v8 = vadd.f32 %v2296_v56, %v6698_v25  ;;  %v2298_v39 = vpop.f32.mrb[31].mxu0  ;;  %v3083_v10 = vpack.c.bf16 %v3047_v47, %v3043_v6  ;;  %3622 = vmatpush1.bf16.msra.mxu0 %v5556_v45 }
 0x245   : > { %v4787_v15 = vadd.f32 %v4786_v5, %v6665_v59  ;;  %v4790_v26 = vadd.f32 %v2298_v39, %v6703_v1  ;;  %3623 = vmatprep.subr.bf16.mxu0 %v5561_v11  ;;  %v5562_v1 = vld [vmem:[#allocation5 + $0x1d0] ss:$8 sps:$4 sm:$0xff]  }
 0x246   : > { %v2986_v40 = vmul.f32 0.2, %v4785_v7  ;;  %v4789_v27 = vadd.f32 %v4788_v8, %v6667_v60  ;;  %3578 = vmatprep.mubr.bf16.mxu0 %v3083_v10  ;;  %vm2922_vm13 = vcmp.gt.f32.partialorder %v4785_v7, 0.0  ;;  %v6827_v60 = vrot.slane %v6693_v20, %v667_v28 }
 0x247   : > { %v2987_v58 = vmul.f32 0.2, %v4787_v15  ;;  %v4791_v25 = vadd.f32 %v4790_v26, %v6669_v61  ;;  %3579 = vmatmul.mubr.bf16.gmra.mrb[56].mxu0 %v3082_v13  ;;  %vm2923_vm14 = vcmp.gt.f32.partialorder %v4787_v15, 0.0 }
 0x248   : > { %vm2926_vm15 = vcmp.gt.f32.partialorder %v4789_v27, 0.0  ;;  %v2990_v59 = vmul.f32 0.2, %v4789_v27  ;;  %3624 = vmatpush1.bf16.msra.mxu0 %v5559_v14  ;;  %v3050_v29 = vsel %vm2922_vm13, %v4785_v7, %v2986_v40 }
 0x249   : > { %vm2927_vm0 = vcmp.gt.f32.partialorder %v4791_v25, 0.0  ;;  %v2991_v41 = vmul.f32 0.2, %v4791_v25  ;;  %3625 = vmatprep.subr.bf16.mxu0 %v5564_v16  ;;  %v3051_v61 = vsel %vm2923_vm14, %v4787_v15, %v2987_v58 }
 0x24a   : > { %v3054_v42 = vsel %vm2926_vm15, %v4789_v27, %v2990_v59 }
 0x24b   : > { %v3055_v34 = vsel %vm2927_vm0, %v4791_v25, %v2991_v41  ;;  %v3086_v35 = vpack.c.bf16 %v3054_v42, %v3050_v29 }
 0x24c   : > { %v3087_v36 = vpack.c.bf16 %v3055_v34, %v3051_v61  ;;  %3626 = vmatpush1.bf16.msra.mxu0 %v5562_v1 }
 0x24d   : > { %3627 = vmatprep.subr.bf16.mxu0 %v5567_v48 }
 0x24e   : > { %3588 = vmatprep.mubr.bf16.mxu0 %v3087_v36 }
 0x24f   : > { %v2787_v50 = vpop.f32.mrb[32].mxu1  ;;  %3589 = vmatmul.mubr.bf16.gmra.mrb[60].mxu0 %v3086_v35 }
 0x250   : > { %v4792_v31 = vadd.f32 %v2787_v50, %v6827_v60  ;;  %v2789_v51 = vpop.f32.mrb[33].mxu1  ;;  %3628 = vmatpush1.bf16.msra.mxu0 %v5565_v37 }
 0x251   : > { %v4793_v38 = vadd.f32 %v2789_v51, %v6830_v49  ;;  %v2791_v43 = vpop.f32.mrb[34].mxu1  ;;  %3629 = vmatprep.subr.bf16.mxu0 %v5570_v19 }
 0x252   : > { %v2932_v52 = vmul.f32 0.2, %v4792_v31  ;;  %v4794_v20 = vadd.f32 %v2791_v43, %v6827_v60  ;;  %v2793_v32 = vpop.f32.mrb[35].mxu1  ;;  %vm2868_vm1 = vcmp.gt.f32.partialorder %v4792_v31, 0.0 }
 0x253   : > { %v2933_v57 = vmul.f32 0.2, %v4793_v38  ;;  %v4795_v62 = vadd.f32 %v2793_v32, %v6830_v49  ;;  %vm2869_vm2 = vcmp.gt.f32.partialorder %v4793_v38, 0.0 }
 0x254   : > { %vm2872_vm3 = vcmp.gt.f32.partialorder %v4794_v20, 0.0  ;;  %v2936_v63 = vmul.f32 0.2, %v4794_v20  ;;  %v2996_v0 = vsel %vm2868_vm1, %v4792_v31, %v2932_v52  ;;  %3630 = vmatpush1.bf16.msra.mxu0 %v5568_v33 }
 0x255   : > { %vm2873_vm4 = vcmp.gt.f32.partialorder %v4795_v62, 0.0  ;;  %v2937_v21 = vmul.f32 0.2, %v4795_v62  ;;  %v2997_v23 = vsel %vm2869_vm2, %v4793_v38, %v2933_v57 }
 0x256   : > { %v3000_v2 = vsel %vm2872_vm3, %v4794_v20, %v2936_v63 }
 0x257   : > { %v3060_v22 = vpack.c.bf16 %v3000_v2, %v2996_v0  ;;  %v2797_v44 = vpop.f32.mrb[36].mxu1  ;;  %v3001_v53 = vsel %vm2873_vm4, %v4795_v62, %v2937_v21 }
 0x258   : > { %v4796_v9 = vadd.f32 %v2797_v44, %v6827_v60  ;;  %v2799_v45 = vpop.f32.mrb[37].mxu1  ;;  %v3061_v54 = vpack.c.bf16 %v3001_v53, %v2997_v23 }
 0x259   : > { %v4797_v3 = vadd.f32 %v2799_v45, %v6830_v49  ;;  %v2801_v11 = vpop.f32.mrb[38].mxu1 }
 0x25a   : > { %v2940_v4 = vmul.f32 0.2, %v4796_v9  ;;  %v4798_v12 = vadd.f32 %v2801_v11, %v6827_v60  ;;  %v2803_v55 = vpop.f32.mrb[39].mxu1  ;;  %3631 = vmatprep.mubr.bf16.mxu0 %v3061_v54  ;;  %vm2876_vm5 = vcmp.gt.f32.partialorder %v4796_v9, 0.0 }
 0x25b   : > { %v2941_v46 = vmul.f32 0.2, %v4797_v3  ;;  %v4799_v5 = vadd.f32 %v2803_v55, %v6830_v49  ;;  %3632 = vmatmul.mubr.bf16.vlgmr.msra.gmra.mrb[32].mxu0 %v3060_v22  ;;  %vm2877_vm6 = vcmp.gt.f32.partialorder %v4797_v3, 0.0 }
 0x25c   : > { %vm2880_vm7 = vcmp.gt.f32.partialorder %v4798_v12, 0.0  ;;  %v2944_v56 = vmul.f32 0.2, %v4798_v12  ;;  %v3004_v47 = vsel %vm2876_vm5, %v4796_v9, %v2940_v4 }
 0x25d   : > { %vm2881_vm8 = vcmp.gt.f32.partialorder %v4799_v5, 0.0  ;;  %v2945_v6 = vmul.f32 0.2, %v4799_v5  ;;  %v3005_v8 = vsel %vm2877_vm6, %v4797_v3, %v2941_v46 }
 0x25e   : > { %v3008_v13 = vsel %vm2880_vm7, %v4798_v12, %v2944_v56 }
 0x25f   : > { %v2807_v7 = vpop.f32.mrb[40].mxu1  ;;  %v3009_v39 = vsel %vm2881_vm8, %v4799_v5, %v2945_v6  ;;  %v3064_v10 = vpack.c.bf16 %v3008_v13, %v3004_v47 }
 0x260   : > { %v4800_v14 = vadd.f32 %v2807_v7, %v6827_v60  ;;  %v2809_v15 = vpop.f32.mrb[41].mxu1  ;;  %v3065_v26 = vpack.c.bf16 %v3009_v39, %v3005_v8 }
 0x261   : > { %v4801_v16 = vadd.f32 %v2809_v15, %v6830_v49  ;;  %v2811_v40 = vpop.f32.mrb[42].mxu1 }
 0x262   : > { %v2948_v27 = vmul.f32 0.2, %v4800_v14  ;;  %v4802_v28 = vadd.f32 %v2811_v40, %v6827_v60  ;;  %v2813_v58 = vpop.f32.mrb[43].mxu1  ;;  %3641 = vmatprep.mubr.bf16.mxu0 %v3065_v26  ;;  %vm2884_vm9 = vcmp.gt.f32.partialorder %v4800_v14, 0.0 }
 0x263   : > { %v2949_v25 = vmul.f32 0.2, %v4801_v16  ;;  %v4803_v30 = vadd.f32 %v2813_v58, %v6830_v49  ;;  %3642 = vmatmul.mubr.bf16.gmra.mrb[36].mxu0 %v3064_v10  ;;  %vm2885_vm10 = vcmp.gt.f32.partialorder %v4801_v16, 0.0 }
 0x264   : > { %vm2888_vm11 = vcmp.gt.f32.partialorder %v4802_v28, 0.0  ;;  %v2952_v59 = vmul.f32 0.2, %v4802_v28  ;;  %v3012_v41 = vsel %vm2884_vm9, %v4800_v14, %v2948_v27 }
 0x265   : > { %vm2889_vm12 = vcmp.gt.f32.partialorder %v4803_v30, 0.0  ;;  %v2953_v1 = vmul.f32 0.2, %v4803_v30  ;;  %v3013_v42 = vsel %vm2885_vm10, %v4801_v16, %v2949_v25 }
 0x266   : > { %v3016_v48 = vsel %vm2888_vm11, %v4802_v28, %v2952_v59 }
 0x267   : > { %v2817_v29 = vpop.f32.mrb[44].mxu1  ;;  %v3017_v61 = vsel %vm2889_vm12, %v4803_v30, %v2953_v1  ;;  %v3068_v34 = vpack.c.bf16 %v3016_v48, %v3012_v41 }
 0x268   : > { %v4804_v35 = vadd.f32 %v2817_v29, %v6827_v60  ;;  %v2819_v36 = vpop.f32.mrb[45].mxu1  ;;  %v3069_v37 = vpack.c.bf16 %v3017_v61, %v3013_v42 }
 0x269   : > { %v4805_v50 = vadd.f32 %v2819_v36, %v6830_v49  ;;  %v2821_v19 = vpop.f32.mrb[46].mxu1 }
 0x26a   : > { %v2956_v31 = vmul.f32 0.2, %v4804_v35  ;;  %v4806_v51 = vadd.f32 %v2821_v19, %v6827_v60  ;;  %v2823_v38 = vpop.f32.mrb[47].mxu1  ;;  %3651 = vmatprep.mubr.bf16.mxu0 %v3069_v37  ;;  %vm2892_vm13 = vcmp.gt.f32.partialorder %v4804_v35, 0.0 }
 0x26b   : > { %v2957_v43 = vmul.f32 0.2, %v4805_v50  ;;  %v4807_v52 = vadd.f32 %v2823_v38, %v6830_v49  ;;  %3652 = vmatmul.mubr.bf16.gmra.mrb[40].mxu0 %v3068_v34  ;;  %vm2893_vm14 = vcmp.gt.f32.partialorder %v4805_v50, 0.0 }
 0x26c   : > { %vm2896_vm15 = vcmp.gt.f32.partialorder %v4806_v51, 0.0  ;;  %v2960_v20 = vmul.f32 0.2, %v4806_v51  ;;  %v3020_v33 = vsel %vm2892_vm13, %v4804_v35, %v2956_v31 }
 0x26d   : > { %vm2897_vm0 = vcmp.gt.f32.partialorder %v4807_v52, 0.0  ;;  %v2961_v32 = vmul.f32 0.2, %v4807_v52  ;;  %v3021_v63 = vsel %vm2893_vm14, %v4805_v50, %v2957_v43 }
 0x26e   : > { %v3024_v57 = vsel %vm2896_vm15, %v4806_v51, %v2960_v20 }
 0x26f   : > { %v2827_v62 = vpop.f32.mrb[48].mxu1  ;;  %v3025_v21 = vsel %vm2897_vm0, %v4807_v52, %v2961_v32  ;;  %v3072_v0 = vpack.c.bf16 %v3024_v57, %v3020_v33 }
 0x270   : > { %v4808_v2 = vadd.f32 %v2827_v62, %v6827_v60  ;;  %v2829_v22 = vpop.f32.mrb[49].mxu1  ;;  %v3073_v44 = vpack.c.bf16 %v3025_v21, %v3021_v63 }
 0x271   : > { %v4809_v23 = vadd.f32 %v2829_v22, %v6830_v49  ;;  %v2831_v53 = vpop.f32.mrb[50].mxu1 }
 0x272   : > { %v2964_v9 = vmul.f32 0.2, %v4808_v2  ;;  %v4810_v45 = vadd.f32 %v2831_v53, %v6827_v60  ;;  %v2833_v54 = vpop.f32.mrb[51].mxu1  ;;  %3661 = vmatprep.mubr.bf16.mxu0 %v3073_v44  ;;  %vm2900_vm1 = vcmp.gt.f32.partialorder %v4808_v2, 0.0 }
 0x273   : > { %v2965_v3 = vmul.f32 0.2, %v4809_v23  ;;  %v4811_v11 = vadd.f32 %v2833_v54, %v6830_v49  ;;  %3662 = vmatmul.mubr.bf16.gmra.mrb[44].mxu0 %v3072_v0  ;;  %vm2901_vm2 = vcmp.gt.f32.partialorder %v4809_v23, 0.0 }
 0x274   : > { %vm2904_vm3 = vcmp.gt.f32.partialorder %v4810_v45, 0.0  ;;  %v2968_v4 = vmul.f32 0.2, %v4810_v45  ;;  %v3028_v55 = vsel %vm2900_vm1, %v4808_v2, %v2964_v9 }
 0x275   : > { %vm2905_vm4 = vcmp.gt.f32.partialorder %v4811_v11, 0.0  ;;  %v2969_v12 = vmul.f32 0.2, %v4811_v11  ;;  %v3029_v56 = vsel %vm2901_vm2, %v4809_v23, %v2965_v3 }
 0x276   : > { %v3032_v46 = vsel %vm2904_vm3, %v4810_v45, %v2968_v4 }
 0x277   : > { %v2837_v5 = vpop.f32.mrb[52].mxu1  ;;  %v3033_v6 = vsel %vm2905_vm4, %v4811_v11, %v2969_v12  ;;  %v3076_v47 = vpack.c.bf16 %v3032_v46, %v3028_v55  ;;  %v3154_v46 = vld [vmem:[%s6994_s4] sm:$0x3] }
 0x278   : > { %v4812_v13 = vadd.f32 %v2837_v5, %v6827_v60  ;;  %v2839_v7 = vpop.f32.mrb[53].mxu1  ;;  %v3077_v8 = vpack.c.bf16 %v3033_v6, %v3029_v56  ;;  %v6874_v5 = vrot.slane %v3154_v46, %v6691_v18  ;;  %v6878_v56 = vrot.slane %v3154_v46, %v663_v24 }
 0x279   : > { %v4813_v39 = vadd.f32 %v2839_v7, %v6830_v49  ;;  %v2841_v10 = vpop.f32.mrb[54].mxu1 }
 0x27a   : > { %v2972_v14 = vmul.f32 0.2, %v4812_v13  ;;  %v4814_v15 = vadd.f32 %v2841_v10, %v6827_v60  ;;  %v2843_v26 = vpop.f32.mrb[55].mxu1  ;;  %3671 = vmatprep.mubr.bf16.mxu0 %v3077_v8  ;;  %vm2908_vm5 = vcmp.gt.f32.partialorder %v4812_v13, 0.0 }
 0x27b   : > { %v2973_v16 = vmul.f32 0.2, %v4813_v39  ;;  %v4815_v40 = vadd.f32 %v2843_v26, %v6830_v49  ;;  %3672 = vmatmul.mubr.bf16.gmra.mrb[48].mxu0 %v3076_v47  ;;  %vm2909_vm6 = vcmp.gt.f32.partialorder %v4813_v39, 0.0 }
 0x27c   : > { %vm2912_vm7 = vcmp.gt.f32.partialorder %v4814_v15, 0.0  ;;  %v2976_v27 = vmul.f32 0.2, %v4814_v15  ;;  %v3036_v58 = vsel %vm2908_vm5, %v4812_v13, %v2972_v14 }
 0x27d   : > { %vm2913_vm8 = vcmp.gt.f32.partialorder %v4815_v40, 0.0  ;;  %v2977_v28 = vmul.f32 0.2, %v4815_v40  ;;  %v3037_v59 = vsel %vm2909_vm6, %v4813_v39, %v2973_v16 }
 0x27e   : > { %v3040_v25 = vsel %vm2912_vm7, %v4814_v15, %v2976_v27 }
 0x27f   : > { %v2847_v30 = vpop.f32.mrb[56].mxu1  ;;  %v3041_v1 = vsel %vm2913_vm8, %v4815_v40, %v2977_v28  ;;  %v3080_v41 = vpack.c.bf16 %v3040_v25, %v3036_v58 }
 0x280   : > { %v4816_v48 = vadd.f32 %v2847_v30, %v6827_v60  ;;  %v2849_v29 = vpop.f32.mrb[57].mxu1  ;;  %v3081_v42 = vpack.c.bf16 %v3041_v1, %v3037_v59 }
 0x281   : > { %v4817_v61 = vadd.f32 %v2849_v29, %v6830_v49  ;;  %v2851_v34 = vpop.f32.mrb[58].mxu1 }
 0x282   : > { %v2980_v35 = vmul.f32 0.2, %v4816_v48  ;;  %v4818_v36 = vadd.f32 %v2851_v34, %v6827_v60  ;;  %v2853_v37 = vpop.f32.mrb[59].mxu1  ;;  %3681 = vmatprep.mubr.bf16.mxu0 %v3081_v42  ;;  %vm2916_vm9 = vcmp.gt.f32.partialorder %v4816_v48, 0.0 }
 0x283   : > { %v2981_v50 = vmul.f32 0.2, %v4817_v61  ;;  %v4819_v19 = vadd.f32 %v2853_v37, %v6830_v49  ;;  %3682 = vmatmul.mubr.bf16.gmra.mrb[52].mxu0 %v3080_v41  ;;  %vm2917_vm10 = vcmp.gt.f32.partialorder %v4817_v61, 0.0 }
 0x284   : > { %vm2920_vm11 = vcmp.gt.f32.partialorder %v4818_v36, 0.0  ;;  %v2984_v31 = vmul.f32 0.2, %v4818_v36  ;;  %v3044_v38 = vsel %vm2916_vm9, %v4816_v48, %v2980_v35 }
 0x285   : > { %vm2921_vm12 = vcmp.gt.f32.partialorder %v4819_v19, 0.0  ;;  %v2985_v51 = vmul.f32 0.2, %v4819_v19  ;;  %v3045_v20 = vsel %vm2917_vm10, %v4817_v61, %v2981_v50 }
 0x286   : > { %v3048_v43 = vsel %vm2920_vm11, %v4818_v36, %v2984_v31 }
 0x287   : > { %v2857_v52 = vpop.f32.mrb[60].mxu1  ;;  %v3049_v32 = vsel %vm2921_vm12, %v4819_v19, %v2985_v51  ;;  %v3084_v33 = vpack.c.bf16 %v3048_v43, %v3044_v38 }
 0x288   : > { %v4820_v57 = vadd.f32 %v2857_v52, %v6827_v60  ;;  %v2859_v62 = vpop.f32.mrb[61].mxu1  ;;  %v3085_v63 = vpack.c.bf16 %v3049_v32, %v3045_v20 }
 0x289   : > { %v4821_v21 = vadd.f32 %v2859_v62, %v6830_v49  ;;  %v2861_v0 = vpop.f32.mrb[62].mxu1 }
 0x28a   : > { %v2988_v2 = vmul.f32 0.2, %v4820_v57  ;;  %v4822_v22 = vadd.f32 %v2861_v0, %v6827_v60  ;;  %v2863_v44 = vpop.f32.mrb[63].mxu1  ;;  %3691 = vmatprep.mubr.bf16.mxu0 %v3085_v63  ;;  %vm2924_vm13 = vcmp.gt.f32.partialorder %v4820_v57, 0.0  ;;  %v5585_v60 = vld [vmem:[%s6995_s5 + $0x78] sm:$0xff]  }
 0x28b   : > { %v2989_v23 = vmul.f32 0.2, %v4821_v21  ;;  %v4823_v53 = vadd.f32 %v2863_v44, %v6830_v49  ;;  %3692 = vmatmul.mubr.bf16.gmra.mrb[56].mxu0 %v3084_v33  ;;  %vm2925_vm14 = vcmp.gt.f32.partialorder %v4821_v21, 0.0  ;;  %v5586_v49 = vld [vmem:[%s6995_s5 + $0x38] sm:$0xff]   ;;  %4678 = vmatprep.subr.bf16.mxu1 %v5585_v60 }
 0x28c   : > { %vm2928_vm15 = vcmp.gt.f32.partialorder %v4822_v22, 0.0  ;;  %v2992_v9 = vmul.f32 0.2, %v4822_v22  ;;  %v3052_v54 = vsel %vm2924_vm13, %v4820_v57, %v2988_v2  ;;  %4679 = vmatpush3.bf16.msra.mxu1 %v5586_v49 }
 0x28d   : > { %vm2929_vm0 = vcmp.gt.f32.partialorder %v4823_v53, 0.0  ;;  %v2993_v45 = vmul.f32 0.2, %v4823_v53  ;;  %v3053_v11 = vsel %vm2925_vm14, %v4821_v21, %v2989_v23 }
 0x28e   : > { %v3056_v3 = vsel %vm2928_vm15, %v4822_v22, %v2992_v9 }
 0x28f   : > { %v3057_v4 = vsel %vm2929_vm0, %v4823_v53, %v2993_v45  ;;  %v3088_v12 = vpack.c.bf16 %v3056_v3, %v3052_v54 }
 0x290   : > { %v3089_v55 = vpack.c.bf16 %v3057_v4, %v3053_v11 }
 0x292   : > { %3701 = vmatprep.mubr.bf16.mxu0 %v3089_v55 }
 0x293   : > { %3702 = vmatmul.mubr.bf16.gmra.mrb[60].mxu0 %v3088_v12 }
 0x32e   : > { %v3633_v6 = vpop.f32.mrb[32].mxu0 }
 0x32f   : > { %v4824_v47 = vadd.f32 %v3633_v6, %v6874_v5  ;;  %v3635_v13 = vpop.f32.mrb[33].mxu0 }
 0x330   : > { %v4825_v7 = vadd.f32 %v3635_v13, %v6878_v56  ;;  %v3637_v8 = vpop.f32.mrb[34].mxu0 }
 0x331   : > { %v3744_v39 = vmul.f32 0.2, %v4824_v47  ;;  %v4826_v10 = vadd.f32 %v3637_v8, %v6874_v5  ;;  %v3639_v14 = vpop.f32.mrb[35].mxu0  ;;  %vm3712_vm1 = vcmp.gt.f32.partialorder %v4824_v47, 0.0 }
 0x332   : > { %v3745_v15 = vmul.f32 0.2, %v4825_v7  ;;  %v4827_v26 = vadd.f32 %v3639_v14, %v6878_v56  ;;  %vm3713_vm2 = vcmp.gt.f32.partialorder %v4825_v7, 0.0 }
 0x333   : > { %vm3714_vm3 = vcmp.gt.f32.partialorder %v4826_v10, 0.0  ;;  %v3746_v17 = vmul.f32 0.2, %v4826_v10  ;;  %v3776_v16 = vsel %vm3712_vm1, %v4824_v47, %v3744_v39 }
 0x334   : > { %vm3715_vm4 = vcmp.gt.f32.partialorder %v4827_v26, 0.0  ;;  %v3747_v24 = vmul.f32 0.2, %v4827_v26  ;;  %v3777_v58 = vsel %vm3713_vm2, %v4825_v7, %v3745_v15 }
 0x335   : > { %v3778_v40 = vsel %vm3714_vm3, %v4826_v10, %v3746_v17 }
 0x336   : > { %v3808_v27 = vpack.c.bf16 %v3778_v40, %v3776_v16  ;;  %v3643_v28 = vpop.f32.mrb[36].mxu0  ;;  %v3779_v25 = vsel %vm3715_vm4, %v4827_v26, %v3747_v24 }
 0x337   : > { %v4828_v30 = vadd.f32 %v3643_v28, %v6874_v5  ;;  %v3645_v59 = vpop.f32.mrb[37].mxu0  ;;  %v3809_v1 = vpack.c.bf16 %v3779_v25, %v3777_v58 }
 0x338   : > { %v4829_v41 = vadd.f32 %v3645_v59, %v6878_v56  ;;  %v3647_v48 = vpop.f32.mrb[38].mxu0 }
 0x339   : > { %v3748_v29 = vmul.f32 0.2, %v4828_v30  ;;  %v4830_v42 = vadd.f32 %v3647_v48, %v6874_v5  ;;  %v3649_v61 = vpop.f32.mrb[39].mxu0  ;;  %3991 = vmatprep.mubr.bf16.mxu1 %v3809_v1  ;;  %vm3716_vm5 = vcmp.gt.f32.partialorder %v4828_v30, 0.0 }
 0x33a   : > { %v3749_v34 = vmul.f32 0.2, %v4829_v41  ;;  %v4831_v35 = vadd.f32 %v3649_v61, %v6878_v56  ;;  %3992 = vmatmul.mubr.bf16.vlgmr.msra.gmra.mrb[64].mxu1 %v3808_v27  ;;  %vm3717_vm6 = vcmp.gt.f32.partialorder %v4829_v41, 0.0 }
 0x33b   : > { %vm3718_vm7 = vcmp.gt.f32.partialorder %v4830_v42, 0.0  ;;  %v3750_v36 = vmul.f32 0.2, %v4830_v42  ;;  %v3780_v50 = vsel %vm3716_vm5, %v4828_v30, %v3748_v29 }
 0x33c   : > { %vm3719_vm8 = vcmp.gt.f32.partialorder %v4831_v35, 0.0  ;;  %v3751_v37 = vmul.f32 0.2, %v4831_v35  ;;  %v3781_v51 = vsel %vm3717_vm6, %v4829_v41, %v3749_v34 }
 0x33d   : > { %v3782_v19 = vsel %vm3718_vm7, %v4830_v42, %v3750_v36 }
 0x33e   : > { %v3653_v31 = vpop.f32.mrb[40].mxu0  ;;  %v3783_v38 = vsel %vm3719_vm8, %v4831_v35, %v3751_v37  ;;  %v3810_v43 = vpack.c.bf16 %v3782_v19, %v3780_v50 }
 0x33f   : > { %v4832_v52 = vadd.f32 %v3653_v31, %v6874_v5  ;;  %v3655_v20 = vpop.f32.mrb[41].mxu0  ;;  %v3811_v32 = vpack.c.bf16 %v3783_v38, %v3781_v51 }
 0x340   : > { %v4833_v33 = vadd.f32 %v3655_v20, %v6878_v56  ;;  %v3657_v57 = vpop.f32.mrb[42].mxu0 }
 0x341   : > { %v3752_v62 = vmul.f32 0.2, %v4832_v52  ;;  %v4834_v63 = vadd.f32 %v3657_v57, %v6874_v5  ;;  %v3659_v21 = vpop.f32.mrb[43].mxu0  ;;  %3999 = vmatprep.mubr.bf16.mxu1 %v3811_v32  ;;  %vm3720_vm9 = vcmp.gt.f32.partialorder %v4832_v52, 0.0 }
 0x342   : > { %v3753_v0 = vmul.f32 0.2, %v4833_v33  ;;  %v4835_v2 = vadd.f32 %v3659_v21, %v6878_v56  ;;  %4000 = vmatmul.mubr.bf16.gmra.mrb[68].mxu1 %v3810_v43  ;;  %vm3721_vm10 = vcmp.gt.f32.partialorder %v4833_v33, 0.0 }
 0x343   : > { %vm3722_vm11 = vcmp.gt.f32.partialorder %v4834_v63, 0.0  ;;  %v3754_v22 = vmul.f32 0.2, %v4834_v63  ;;  %v3784_v23 = vsel %vm3720_vm9, %v4832_v52, %v3752_v62 }
 0x344   : > { %vm3723_vm12 = vcmp.gt.f32.partialorder %v4835_v2, 0.0  ;;  %v3755_v44 = vmul.f32 0.2, %v4835_v2  ;;  %v3785_v45 = vsel %vm3721_vm10, %v4833_v33, %v3753_v0 }
 0x345   : > { %v3786_v53 = vsel %vm3722_vm11, %v4834_v63, %v3754_v22 }
 0x346   : > { %v3663_v9 = vpop.f32.mrb[44].mxu0  ;;  %v3787_v54 = vsel %vm3723_vm12, %v4835_v2, %v3755_v44  ;;  %v3812_v3 = vpack.c.bf16 %v3786_v53, %v3784_v23 }
 0x347   : > { %v4836_v11 = vadd.f32 %v3663_v9, %v6874_v5  ;;  %v3665_v4 = vpop.f32.mrb[45].mxu0  ;;  %v3813_v12 = vpack.c.bf16 %v3787_v54, %v3785_v45 }
 0x348   : > { %v4837_v55 = vadd.f32 %v3665_v4, %v6878_v56  ;;  %v3667_v60 = vpop.f32.mrb[46].mxu0 }
 0x349   : > { %v3756_v49 = vmul.f32 0.2, %v4836_v11  ;;  %v4838_v46 = vadd.f32 %v3667_v60, %v6874_v5  ;;  %v3669_v6 = vpop.f32.mrb[47].mxu0  ;;  %4007 = vmatprep.mubr.bf16.mxu1 %v3813_v12  ;;  %vm3724_vm13 = vcmp.gt.f32.partialorder %v4836_v11, 0.0 }
 0x34a   : > { %v3757_v47 = vmul.f32 0.2, %v4837_v55  ;;  %v4839_v13 = vadd.f32 %v3669_v6, %v6878_v56  ;;  %4008 = vmatmul.mubr.bf16.gmra.mrb[72].mxu1 %v3812_v3  ;;  %vm3725_vm14 = vcmp.gt.f32.partialorder %v4837_v55, 0.0 }
 0x34b   : > { %vm3726_vm15 = vcmp.gt.f32.partialorder %v4838_v46, 0.0  ;;  %v3758_v7 = vmul.f32 0.2, %v4838_v46  ;;  %v3788_v39 = vsel %vm3724_vm13, %v4836_v11, %v3756_v49 }
 0x34c   : > { %vm3727_vm0 = vcmp.gt.f32.partialorder %v4839_v13, 0.0  ;;  %v3759_v8 = vmul.f32 0.2, %v4839_v13  ;;  %v3789_v15 = vsel %vm3725_vm14, %v4837_v55, %v3757_v47 }
 0x34d   : > { %v3790_v10 = vsel %vm3726_vm15, %v4838_v46, %v3758_v7 }
 0x34e   : > { %v3673_v14 = vpop.f32.mrb[48].mxu0  ;;  %v3791_v26 = vsel %vm3727_vm0, %v4839_v13, %v3759_v8  ;;  %v3814_v17 = vpack.c.bf16 %v3790_v10, %v3788_v39 }
 0x34f   : > { %v4840_v24 = vadd.f32 %v3673_v14, %v6874_v5  ;;  %v3675_v16 = vpop.f32.mrb[49].mxu0  ;;  %v3815_v40 = vpack.c.bf16 %v3791_v26, %v3789_v15 }
 0x350   : > { %v4841_v27 = vadd.f32 %v3675_v16, %v6878_v56  ;;  %v3677_v28 = vpop.f32.mrb[50].mxu0 }
 0x351   : > { %v3760_v58 = vmul.f32 0.2, %v4840_v24  ;;  %v4842_v25 = vadd.f32 %v3677_v28, %v6874_v5  ;;  %v3679_v30 = vpop.f32.mrb[51].mxu0  ;;  %4015 = vmatprep.mubr.bf16.mxu1 %v3815_v40  ;;  %vm3728_vm1 = vcmp.gt.f32.partialorder %v4840_v24, 0.0 }
 0x352   : > { %v3761_v59 = vmul.f32 0.2, %v4841_v27  ;;  %v4843_v1 = vadd.f32 %v3679_v30, %v6878_v56  ;;  %4016 = vmatmul.mubr.bf16.gmra.mrb[76].mxu1 %v3814_v17  ;;  %vm3729_vm2 = vcmp.gt.f32.partialorder %v4841_v27, 0.0 }
 0x353   : > { %vm3730_vm3 = vcmp.gt.f32.partialorder %v4842_v25, 0.0  ;;  %v3762_v41 = vmul.f32 0.2, %v4842_v25  ;;  %v3792_v29 = vsel %vm3728_vm1, %v4840_v24, %v3760_v58 }
 0x354   : > { %vm3731_vm4 = vcmp.gt.f32.partialorder %v4843_v1, 0.0  ;;  %v3763_v48 = vmul.f32 0.2, %v4843_v1  ;;  %v3793_v34 = vsel %vm3729_vm2, %v4841_v27, %v3761_v59 }
 0x355   : > { %v3794_v42 = vsel %vm3730_vm3, %v4842_v25, %v3762_v41 }
 0x356   : > { %v3683_v61 = vpop.f32.mrb[52].mxu0  ;;  %v3795_v35 = vsel %vm3731_vm4, %v4843_v1, %v3763_v48  ;;  %v3816_v36 = vpack.c.bf16 %v3794_v42, %v3792_v29  ;;  %v6912_v29 = vld [vmem:[#allocation7] ss:$0 sm:$0xff] }
 0x357   : > { %v4844_v37 = vadd.f32 %v3683_v61, %v6874_v5  ;;  %v3685_v50 = vpop.f32.mrb[53].mxu0  ;;  %v3817_v19 = vpack.c.bf16 %v3795_v35, %v3793_v34 }
 0x358   : > { %v4845_v31 = vadd.f32 %v3685_v50, %v6878_v56  ;;  %v3687_v51 = vpop.f32.mrb[54].mxu0 }
 0x359   : > { %v3764_v38 = vmul.f32 0.2, %v4844_v37  ;;  %v4846_v43 = vadd.f32 %v3687_v51, %v6874_v5  ;;  %v3689_v52 = vpop.f32.mrb[55].mxu0  ;;  %4023 = vmatprep.mubr.bf16.mxu1 %v3817_v19  ;;  %vm3732_vm5 = vcmp.gt.f32.partialorder %v4844_v37, 0.0 }
 0x35a   : > { %v3765_v20 = vmul.f32 0.2, %v4845_v31  ;;  %v4847_v32 = vadd.f32 %v3689_v52, %v6878_v56  ;;  %4024 = vmatmul.mubr.bf16.gmra.mrb[80].mxu1 %v3816_v36  ;;  %vm3733_vm6 = vcmp.gt.f32.partialorder %v4845_v31, 0.0 }
 0x35b   : > { %vm3734_vm7 = vcmp.gt.f32.partialorder %v4846_v43, 0.0  ;;  %v3766_v33 = vmul.f32 0.2, %v4846_v43  ;;  %v3796_v62 = vsel %vm3732_vm5, %v4844_v37, %v3764_v38 }
 0x35c   : > { %vm3735_vm8 = vcmp.gt.f32.partialorder %v4847_v32, 0.0  ;;  %v3767_v57 = vmul.f32 0.2, %v4847_v32  ;;  %v3797_v0 = vsel %vm3733_vm6, %v4845_v31, %v3765_v20 }
 0x35d   : > { %v3798_v63 = vsel %vm3734_vm7, %v4846_v43, %v3766_v33 }
 0x35e   : > { %v3693_v21 = vpop.f32.mrb[56].mxu0  ;;  %v3799_v2 = vsel %vm3735_vm8, %v4847_v32, %v3767_v57  ;;  %v3818_v22 = vpack.c.bf16 %v3798_v63, %v3796_v62 }
 0x35f   : > { %v4848_v44 = vadd.f32 %v3693_v21, %v6874_v5  ;;  %v3695_v23 = vpop.f32.mrb[57].mxu0  ;;  %v3819_v53 = vpack.c.bf16 %v3799_v2, %v3797_v0 }
 0x360   : > { %v4849_v9 = vadd.f32 %v3695_v23, %v6878_v56  ;;  %v3697_v45 = vpop.f32.mrb[58].mxu0 }
 0x361   : > { %v3768_v54 = vmul.f32 0.2, %v4848_v44  ;;  %v4850_v3 = vadd.f32 %v3697_v45, %v6874_v5  ;;  %v3699_v11 = vpop.f32.mrb[59].mxu0  ;;  %4031 = vmatprep.mubr.bf16.mxu1 %v3819_v53  ;;  %vm3736_vm9 = vcmp.gt.f32.partialorder %v4848_v44, 0.0 }
 0x362   : > { %v3769_v4 = vmul.f32 0.2, %v4849_v9  ;;  %v4851_v12 = vadd.f32 %v3699_v11, %v6878_v56  ;;  %4032 = vmatmul.mubr.bf16.gmra.mrb[84].mxu1 %v3818_v22  ;;  %vm3737_vm10 = vcmp.gt.f32.partialorder %v4849_v9, 0.0 }
 0x363   : > { %vm3738_vm11 = vcmp.gt.f32.partialorder %v4850_v3, 0.0  ;;  %v3770_v55 = vmul.f32 0.2, %v4850_v3  ;;  %v3800_v49 = vsel %vm3736_vm9, %v4848_v44, %v3768_v54 }
 0x364   : > { %vm3739_vm12 = vcmp.gt.f32.partialorder %v4851_v12, 0.0  ;;  %v3771_v60 = vmul.f32 0.2, %v4851_v12  ;;  %v3801_v47 = vsel %vm3737_vm10, %v4849_v9, %v3769_v4 }
 0x365   : > { %v3802_v46 = vsel %vm3738_vm11, %v4850_v3, %v3770_v55 }
 0x366   : > { %v3703_v6 = vpop.f32.mrb[60].mxu0  ;;  %v3803_v13 = vsel %vm3739_vm12, %v4851_v12, %v3771_v60  ;;  %v3820_v7 = vpack.c.bf16 %v3802_v46, %v3800_v49 }
 0x367   : > { %v4852_v8 = vadd.f32 %v3703_v6, %v6874_v5  ;;  %v3705_v39 = vpop.f32.mrb[61].mxu0  ;;  %v3821_v10 = vpack.c.bf16 %v3803_v13, %v3801_v47 }
 0x368   : > { %v4853_v14 = vadd.f32 %v3705_v39, %v6878_v56  ;;  %v3707_v15 = vpop.f32.mrb[62].mxu0 }
 0x369   : > { %v3772_v26 = vmul.f32 0.2, %v4852_v8  ;;  %v4854_v17 = vadd.f32 %v3707_v15, %v6874_v5  ;;  %v3709_v24 = vpop.f32.mrb[63].mxu0  ;;  %4039 = vmatprep.mubr.bf16.mxu1 %v3821_v10  ;;  %vm3740_vm13 = vcmp.gt.f32.partialorder %v4852_v8, 0.0  ;;  %v4104_v5 = vld [vmem:[#allocation8] sm:$0x1] }
 0x36a   : > { %v3773_v16 = vmul.f32 0.2, %v4853_v14  ;;  %v4855_v40 = vadd.f32 %v3709_v24, %v6878_v56  ;;  %4040 = vmatmul.mubr.bf16.gmra.mrb[88].mxu1 %v3820_v7  ;;  %vm3741_vm14 = vcmp.gt.f32.partialorder %v4853_v14, 0.0  ;;  %v4105_v56 = vunpack.c.l.bf16 %v4104_v5 }
 0x36b   : > { %vm3742_vm15 = vcmp.gt.f32.partialorder %v4854_v17, 0.0  ;;  %v3774_v27 = vmul.f32 0.2, %v4854_v17  ;;  %v3804_v58 = vsel %vm3740_vm13, %v4852_v8, %v3772_v26 }
 0x36c   : > { %vm3743_vm0 = vcmp.gt.f32.partialorder %v4855_v40, 0.0  ;;  %v3775_v28 = vmul.f32 0.2, %v4855_v40  ;;  %v3805_v30 = vsel %vm3741_vm14, %v4853_v14, %v3773_v16  ;;  %v6916_v50 = vrot.slane %v4105_v56, %v6691_v18 }
 0x36d   : > { %v3806_v25 = vsel %vm3742_vm15, %v4854_v17, %v3774_v27 }
 0x36e   : > { %v3807_v59 = vsel %vm3743_vm0, %v4855_v40, %v3775_v28  ;;  %v3822_v1 = vpack.c.bf16 %v3806_v25, %v3804_v58 }
 0x36f   : > { %v3823_v41 = vpack.c.bf16 %v3807_v59, %v3805_v30 }
 0x371   : > { %4047 = vmatprep.mubr.bf16.mxu1 %v3823_v41 }
 0x372   : > { %4048 = vmatmul.mubr.bf16.gmra.mrb[92].mxu1 %v3822_v1 }
 0x40d   : > { %v4680_v48 = vpop.f32.mrb[64].mxu1 }
 0x40e   : > { %v4681_v42 = vpop.f32.mrb[65].mxu1 }
 0x40f   : > { %v4682_v61 = vadd.f32 %v4681_v42, %v4680_v48  ;;  %v4683_v34 = vpop.f32.mrb[66].mxu1 }
 0x410   : > { %v4684_v35 = vpop.f32.mrb[67].mxu1 }
 0x411   : > { %v3994_v36 = vadd.f32 %v4682_v61, %v6912_v29  ;;  %v4685_v37 = vadd.f32 %v4684_v35, %v4683_v34 }
 0x413   : > { %v3997_v19 = vadd.f32 %v4685_v37, %v6912_v29  ;;  %vm4056_vm1 = vcmp.gt.f32.partialorder %v3994_v36, 0.0  ;;  %v4072_v31 = vmul.f32 0.2, %v3994_v36 }
 0x415   : > { %v4686_v51 = vpop.f32.mrb[68].mxu1  ;;  %v4088_v38 = vsel %vm4056_vm1, %v3994_v36, %v4072_v31  ;;  %vm4057_vm2 = vcmp.gt.f32.partialorder %v3997_v19, 0.0  ;;  %v4073_v43 = vmul.f32 0.2, %v3997_v19  ;;  %vm4181_vm1 = vcmask 7168  }
 0x416   : > { %v4687_v52 = vpop.f32.mrb[69].mxu1  ;;  %v4110_v20 = vmul.f32 %v6916_v50, %v4088_v38 }
 0x417   : > { %v4688_v32 = vadd.f32 %v4687_v52, %v4686_v51  ;;  %v4689_v33 = vpop.f32.mrb[70].mxu1  ;;  %v4089_v57 = vsel %vm4057_vm2, %v3997_v19, %v4073_v43 }
 0x418   : > { %v4690_v62 = vpop.f32.mrb[71].mxu1  ;;  %4126 = vadd.xlane.f32.xlu0 %v4110_v20  ;;  %v4111_v21 = vmul.f32 %v6916_v50, %v4089_v57 }
 0x419   : > { %v4002_v63 = vadd.f32 %v4688_v32, %v6912_v29  ;;  %v4691_v18 = vadd.f32 %v4690_v62, %v4689_v33 }
 0x41b   : > { %v4005_v0 = vadd.f32 %v4691_v18, %v6912_v29  ;;  %vm4058_vm3 = vcmp.gt.f32.partialorder %v4002_v63, 0.0  ;;  %v4074_v2 = vmul.f32 0.2, %v4002_v63 }
 0x41c   : > { %4128 = vadd.xlane.f32.xlu0 %v4111_v21 }
 0x41d   : > { %v4692_v22 = vpop.f32.mrb[72].mxu1  ;;  %v4090_v44 = vsel %vm4058_vm3, %v4002_v63, %v4074_v2  ;;  %vm4059_vm4 = vcmp.gt.f32.partialorder %v4005_v0, 0.0  ;;  %v4075_v23 = vmul.f32 0.2, %v4005_v0 }
 0x41e   : > { %v4693_v53 = vpop.f32.mrb[73].mxu1  ;;  %v4112_v9 = vmul.f32 %v6916_v50, %v4090_v44 }
 0x41f   : > { %v4694_v45 = vadd.f32 %v4693_v53, %v4692_v22  ;;  %v4695_v54 = vpop.f32.mrb[74].mxu1  ;;  %v4091_v3 = vsel %vm4059_vm4, %v4005_v0, %v4075_v23 }
 0x420   : > { %v4696_v11 = vpop.f32.mrb[75].mxu1  ;;  %4130 = vadd.xlane.f32.xlu1 %v4112_v9  ;;  %v4113_v55 = vmul.f32 %v6916_v50, %v4091_v3 }
 0x421   : > { %v4010_v4 = vadd.f32 %v4694_v45, %v6912_v29  ;;  %v4697_v12 = vadd.f32 %v4696_v11, %v4695_v54 }
 0x423   : > { %v4013_v60 = vadd.f32 %v4697_v12, %v6912_v29  ;;  %vm4060_vm5 = vcmp.gt.f32.partialorder %v4010_v4, 0.0  ;;  %v4076_v49 = vmul.f32 0.2, %v4010_v4 }
 0x424   : > { %4132 = vadd.xlane.f32.xlu1 %v4113_v55 }
 0x425   : > { %v4698_v46 = vpop.f32.mrb[76].mxu1  ;;  %v4092_v6 = vsel %vm4060_vm5, %v4010_v4, %v4076_v49  ;;  %vm4061_vm6 = vcmp.gt.f32.partialorder %v4013_v60, 0.0  ;;  %v4077_v47 = vmul.f32 0.2, %v4013_v60 }
 0x426   : > { %v4699_v13 = vpop.f32.mrb[77].mxu1  ;;  %v4114_v7 = vmul.f32 %v6916_v50, %v4092_v6 }
 0x427   : > { %v4700_v8 = vadd.f32 %v4699_v13, %v4698_v46  ;;  %v4701_v39 = vpop.f32.mrb[78].mxu1  ;;  %v4093_v10 = vsel %vm4061_vm6, %v4013_v60, %v4077_v47 }
 0x428   : > { %v4702_v14 = vpop.f32.mrb[79].mxu1  ;;  %4134 = vadd.xlane.f32.xlu0 %v4114_v7  ;;  %v4115_v15 = vmul.f32 %v6916_v50, %v4093_v10 }
 0x429   : > { %v4018_v26 = vadd.f32 %v4700_v8, %v6912_v29  ;;  %v4703_v17 = vadd.f32 %v4702_v14, %v4701_v39 }
 0x42a   : > { %4136 = vadd.xlane.f32.xlu1 %v4115_v15 }
 0x42b   : > { %v4021_v24 = vadd.f32 %v4703_v17, %v6912_v29  ;;  %vm4062_vm7 = vcmp.gt.f32.partialorder %v4018_v26, 0.0  ;;  %v4078_v16 = vmul.f32 0.2, %v4018_v26 }
 0x42d   : > { %v4704_v40 = vpop.f32.mrb[80].mxu1  ;;  %v4094_v27 = vsel %vm4062_vm7, %v4018_v26, %v4078_v16  ;;  %vm4063_vm8 = vcmp.gt.f32.partialorder %v4021_v24, 0.0  ;;  %v4079_v28 = vmul.f32 0.2, %v4021_v24  ;;  %v4661_v16 = vld [vmem:[#allocation2] ss:$0 sm:$0xff] }
 0x42e   : > { %v4705_v58 = vpop.f32.mrb[81].mxu1  ;;  %v4116_v25 = vmul.f32 %v6916_v50, %v4094_v27 }
 0x42f   : > { %v4706_v30 = vadd.f32 %v4705_v58, %v4704_v40  ;;  %v4707_v59 = vpop.f32.mrb[82].mxu1  ;;  %v4095_v1 = vsel %vm4063_vm8, %v4021_v24, %v4079_v28 }
 0x430   : > { %v4708_v41 = vpop.f32.mrb[83].mxu1  ;;  %4138 = vadd.xlane.f32.xlu0 %v4116_v25  ;;  %v4117_v5 = vmul.f32 %v6916_v50, %v4095_v1 }
 0x431   : > { %v4026_v48 = vadd.f32 %v4706_v30, %v6912_v29  ;;  %v4709_v42 = vadd.f32 %v4708_v41, %v4707_v59 }
 0x432   : > { %4140 = vadd.xlane.f32.xlu1 %v4117_v5 }
 0x433   : > { %v4029_v56 = vadd.f32 %v4709_v42, %v6912_v29  ;;  %vm4064_vm9 = vcmp.gt.f32.partialorder %v4026_v48, 0.0  ;;  %v4080_v61 = vmul.f32 0.2, %v4026_v48 }
 0x435   : > { %v4710_v34 = vpop.f32.mrb[84].mxu1  ;;  %v4096_v35 = vsel %vm4064_vm9, %v4026_v48, %v4080_v61  ;;  %vm4065_vm10 = vcmp.gt.f32.partialorder %v4029_v56, 0.0  ;;  %v4081_v36 = vmul.f32 0.2, %v4029_v56 }
 0x436   : > { %v4711_v37 = vpop.f32.mrb[85].mxu1  ;;  %v4118_v19 = vmul.f32 %v6916_v50, %v4096_v35 }
 0x437   : > { %v4712_v31 = vadd.f32 %v4711_v37, %v4710_v34  ;;  %v4713_v51 = vpop.f32.mrb[86].mxu1  ;;  %v4097_v38 = vsel %vm4065_vm10, %v4029_v56, %v4081_v36 }
 0x438   : > { %v4714_v43 = vpop.f32.mrb[87].mxu1  ;;  %4142 = vadd.xlane.f32.xlu0 %v4118_v19  ;;  %v4119_v52 = vmul.f32 %v6916_v50, %v4097_v38 }
 0x439   : > { %v4034_v20 = vadd.f32 %v4712_v31, %v6912_v29  ;;  %v4715_v32 = vadd.f32 %v4714_v43, %v4713_v51 }
 0x43a   : > { %4144 = vadd.xlane.f32.xlu1 %v4119_v52 }
 0x43b   : > { %v4037_v33 = vadd.f32 %v4715_v32, %v6912_v29  ;;  %vm4066_vm11 = vcmp.gt.f32.partialorder %v4034_v20, 0.0  ;;  %v4082_v57 = vmul.f32 0.2, %v4034_v20 }
 0x43d   : > { %v4716_v62 = vpop.f32.mrb[88].mxu1  ;;  %v4098_v63 = vsel %vm4066_vm11, %v4034_v20, %v4082_v57  ;;  %vm4067_vm12 = vcmp.gt.f32.partialorder %v4037_v33, 0.0  ;;  %v4083_v18 = vmul.f32 0.2, %v4037_v33 }
 0x43e   : > { %v4717_v21 = vpop.f32.mrb[89].mxu1  ;;  %v4120_v0 = vmul.f32 %v6916_v50, %v4098_v63 }
 0x43f   : > { %v4718_v2 = vadd.f32 %v4717_v21, %v4716_v62  ;;  %v4719_v22 = vpop.f32.mrb[90].mxu1  ;;  %v4099_v44 = vsel %vm4067_vm12, %v4037_v33, %v4083_v18 }
 0x440   : > { %v4720_v23 = vpop.f32.mrb[91].mxu1  ;;  %4146 = vadd.xlane.f32.xlu0 %v4120_v0  ;;  %v4121_v53 = vmul.f32 %v6916_v50, %v4099_v44 }
 0x441   : > { %v4042_v9 = vadd.f32 %v4718_v2, %v6912_v29  ;;  %v4721_v45 = vadd.f32 %v4720_v23, %v4719_v22 }
 0x442   : > { %4148 = vadd.xlane.f32.xlu1 %v4121_v53 }
 0x443   : > { %v4045_v54 = vadd.f32 %v4721_v45, %v6912_v29  ;;  %vm4068_vm13 = vcmp.gt.f32.partialorder %v4042_v9, 0.0  ;;  %v4084_v3 = vmul.f32 0.2, %v4042_v9 }
 0x445   : > { %v4722_v11 = vpop.f32.mrb[92].mxu1  ;;  %v4100_v4 = vsel %vm4068_vm13, %v4042_v9, %v4084_v3  ;;  %vm4069_vm14 = vcmp.gt.f32.partialorder %v4045_v54, 0.0  ;;  %v4085_v12 = vmul.f32 0.2, %v4045_v54 }
 0x446   : > { %v4723_v55 = vpop.f32.mrb[93].mxu1  ;;  %v4122_v60 = vmul.f32 %v6916_v50, %v4100_v4 }
 0x447   : > { %v4724_v49 = vadd.f32 %v4723_v55, %v4722_v11  ;;  %v4725_v46 = vpop.f32.mrb[94].mxu1  ;;  %v4101_v6 = vsel %vm4069_vm14, %v4045_v54, %v4085_v12 }
 0x448   : > { %v4726_v47 = vpop.f32.mrb[95].mxu1  ;;  %4150 = vadd.xlane.f32.xlu0 %v4122_v60  ;;  %v4123_v13 = vmul.f32 %v6916_v50, %v4101_v6 }
 0x449   : > { %v4050_v7 = vadd.f32 %v4724_v49, %v6912_v29  ;;  %v4727_v8 = vadd.f32 %v4726_v47, %v4725_v46 }
 0x44a   : > { %4152 = vadd.xlane.f32.xlu1 %v4123_v13 }
 0x44b   : > { %v4053_v39 = vadd.f32 %v4727_v8, %v6912_v29  ;;  %vm4070_vm15 = vcmp.gt.f32.partialorder %v4050_v7, 0.0  ;;  %v4086_v10 = vmul.f32 0.2, %v4050_v7 }
 0x44d   : > { %v4102_v14 = vsel %vm4070_vm15, %v4050_v7, %v4086_v10  ;;  %vm4071_vm0 = vcmp.gt.f32.partialorder %v4053_v39, 0.0  ;;  %v4087_v15 = vmul.f32 0.2, %v4053_v39 }
 0x44e   : > { %v4124_v26 = vmul.f32 %v6916_v50, %v4102_v14 }
 0x44f   : > { %v4103_v17 = vsel %vm4071_vm0, %v4053_v39, %v4087_v15 }
 0x450   : > { %4154 = vadd.xlane.f32.xlu0 %v4124_v26  ;;  %v4125_v24 = vmul.f32 %v6916_v50, %v4103_v17 }
 0x452   : > { %4156 = vadd.xlane.f32.xlu1 %v4125_v24 }
 0x4a5   : > { %v4127_v29 = vpop.xlane.xlu0 %4126 }
 0x4a6   : > { %v4165_v40 = vadd.f32 %v4661_v16, %v4127_v29 }
 0x4a8   : > { %4182 = vst.msk [vmem:[%s6953_s19] sm:$0xff] %vm4181_vm1, %v4165_v40 }
 0x4a9   : > { %v4129_v50 = vpop.xlane.xlu0 %4128 }
 0x4aa   : > { %v4166_v27 = vadd.f32 %v4661_v16, %v4129_v50 }
 0x4ac   : > { %4183 = vst.msk [vmem:[%s6953_s19 + $0x8] sm:$0xff] %vm4181_vm1, %v4166_v27 }
 0x4ad   : > { %v4131_v28 = vpop.xlane.xlu1 %4130 }
 0x4ae   : > { %v4167_v58 = vadd.f32 %v4661_v16, %v4131_v28 }
 0x4b0   : > { %4184 = vst.msk [vmem:[%s6953_s19 + $0x10] sm:$0xff] %vm4181_vm1, %v4167_v58 }
 0x4b1   : > { %v4133_v25 = vpop.xlane.xlu1 %4132 }
 0x4b2   : > { %v4168_v30 = vadd.f32 %v4661_v16, %v4133_v25 }
 0x4b4   : > { %4185 = vst.msk [vmem:[%s6953_s19 + $0x18] sm:$0xff] %vm4181_vm1, %v4168_v30 }
 0x4b5   : > { %v4135_v59 = vpop.xlane.xlu0 %4134 }
 0x4b6   : > { %v4169_v1 = vadd.f32 %v4661_v16, %v4135_v59 }
 0x4b7   : > { %v4137_v41 = vpop.xlane.xlu1 %4136 }
 0x4b8   : > { %4186 = vst.msk [vmem:[%s6953_s19 + $0x20] sm:$0xff] %vm4181_vm1, %v4169_v1  ;;  %v4170_v5 = vadd.f32 %v4661_v16, %v4137_v41 }
 0x4ba   : > { %4187 = vst.msk [vmem:[%s6953_s19 + $0x28] sm:$0xff] %vm4181_vm1, %v4170_v5 }
 0x4bd   : > { %v4139_v48 = vpop.xlane.xlu0 %4138 }
 0x4be   : > { %v4171_v42 = vadd.f32 %v4661_v16, %v4139_v48 }
 0x4bf   : > { %v4141_v56 = vpop.xlane.xlu1 %4140 }
 0x4c0   : > { %4188 = vst.msk [vmem:[%s6953_s19 + $0x30] sm:$0xff] %vm4181_vm1, %v4171_v42  ;;  %v4172_v61 = vadd.f32 %v4661_v16, %v4141_v56 }
 0x4c2   : > { %4189 = vst.msk [vmem:[%s6953_s19 + $0x38] sm:$0xff] %vm4181_vm1, %v4172_v61 }
 0x4c5   : > { %v4143_v34 = vpop.xlane.xlu0 %4142 }
 0x4c6   : > { %v4173_v35 = vadd.f32 %v4661_v16, %v4143_v34 }
 0x4c7   : > { %v4145_v36 = vpop.xlane.xlu1 %4144 }
 0x4c8   : > { %4190 = vst.msk [vmem:[%s6953_s19 + $0x40] sm:$0xff] %vm4181_vm1, %v4173_v35  ;;  %v4174_v37 = vadd.f32 %v4661_v16, %v4145_v36 }
 0x4ca   : > { %4191 = vst.msk [vmem:[%s6953_s19 + $0x48] sm:$0xff] %vm4181_vm1, %v4174_v37 }
 0x4cd   : > { %v4147_v19 = vpop.xlane.xlu0 %4146 }
 0x4ce   : > { %v4175_v31 = vadd.f32 %v4661_v16, %v4147_v19 }
 0x4cf   : > { %v4149_v51 = vpop.xlane.xlu1 %4148 }
 0x4d0   : > { %4192 = vst.msk [vmem:[%s6953_s19 + $0x50] sm:$0xff] %vm4181_vm1, %v4175_v31  ;;  %v4176_v38 = vadd.f32 %v4661_v16, %v4149_v51 }
 0x4d2   : > { %4193 = vst.msk [vmem:[%s6953_s19 + $0x58] sm:$0xff] %vm4181_vm1, %v4176_v38 }
 0x4d5   : > { %v4151_v43 = vpop.xlane.xlu0 %4150 }
 0x4d6   : > { %v4177_v52 = vadd.f32 %v4661_v16, %v4151_v43 }
 0x4d7   : > { %v4153_v20 = vpop.xlane.xlu1 %4152 }
 0x4d8   : > { %4194 = vst.msk [vmem:[%s6953_s19 + $0x60] sm:$0xff] %vm4181_vm1, %v4177_v52  ;;  %v4178_v32 = vadd.f32 %v4661_v16, %v4153_v20 }
 0x4da   : > { %4195 = vst.msk [vmem:[%s6953_s19 + $0x68] sm:$0xff] %vm4181_vm1, %v4178_v32 }
 0x4dd   : > { %v4155_v33 = vpop.xlane.xlu0 %4154 }
 0x4de   : > { %v4179_v57 = vadd.f32 %v4661_v16, %v4155_v33 }
 0x4df   : > { %v4157_v62 = vpop.xlane.xlu1 %4156 }
 0x4e0   : > { %4196 = vst.msk [vmem:[%s6953_s19 + $0x70] sm:$0xff] %vm4181_vm1, %v4179_v57  ;;  %v4180_v63 = vadd.f32 %v4661_v16, %v4157_v62 }
 0x4e2   : > { %4197 = vst.msk [vmem:[%s6953_s19 + $0x78] sm:$0xff] %vm4181_vm1, %v4180_v63 }
 0x4e3 PF: > { %s24_s11 = sadd.s32 1, %s5725_s11  }
 0x4e4   : > { %p21_p3 = scmp.ge.s32.totalorder %s24_s11, 4  }
 0x4e6   :  { %23 = sbr.rel (!%p21_p3) target bundleno = 6 (0x6), region = 103 }
 0x4ed   :  { %4220 = vsyncpa [#allocation4], 1 }
 0x4ee   :  { %4222 = vsyncpa [#allocation4 + $0x1], 1 }
 0x4ef   :  { %4223 = vsyncpa [#allocation6], 1 }
 0x4f0   :  { %4224 = vsyncpa [#allocation9], 1 }

</bundles_post_ra>
